<compile_context>
chip_gen: v7x
topology: tpu7x:2x2x1
jax: 0.10.0
libtpu: 0.0.40
codegen_flags: <defaults>
</compile_context>

<pallas_src>
import functools

import jax
import jax.numpy as jnp
from jax.experimental import pallas as pl
from jax.experimental.pallas import tpu as pltpu

EPS_KNN = float(jnp.finfo(jnp.float32).eps)   # torch.finfo(float32).eps
BN_EPS = 1e-5                                  # nn.BatchNorm1d default eps

_KEY_LOW = 0xFFF            # low 12 bits of the packed (distance | column) key
_KEY_HIGH = ~0xFFF          # masks the truncated-distance bits (= -4096 as int32)
_KEY_SENTINEL = 0x7FFFFFFF  # int32 max; larger than any packed finite-distance key
_KEY_INF = 0x7F800000       # bit pattern of +inf; keys >= this are invalid neighbours


def _round_up(x, m):
    return ((x + m - 1) // m) * m


def _pick_tile(total, target):
    """Largest multiple of 8 that is <= target and divides `total` (total % 8 == 0)."""
    assert total % 8 == 0, total
    t = min(target, total)
    t = max(8, t - (t % 8))
    while total % t != 0:
        t -= 8
    return t


@functools.lru_cache(maxsize=None)
def _vmem_limit_bytes():
    # ~48 MiB on v7x (64 MiB physical per TC), ~96 MiB on v5e/v6e (128 MiB physical).
    try:
        cap = int(pltpu.get_tpu_info().vmem_capacity_bytes)
    except Exception:
        cap = 128 * 1024 * 1024
    return min(cap * 3 // 4, 100 * 1024 * 1024)


# ----------------------------------------------------------------------------
# Kernel 1: masked KNN + inverse-distance-weighted feature interpolation
# ----------------------------------------------------------------------------
def _knn_interp_kernel(len1_ref, len2_ref, qaug_ref, paug_ref, pts2_ref,
                       interp_ref, idx_ref, *, K, TN, S, packed):
    b = pl.program_id(0)
    t = pl.program_id(1)

    # squared distances on the MXU: q_aug @ p_aug = ||q||^2 + ||p||^2 - 2 q.p
    d = jnp.dot(qaug_ref[0], paug_ref[0], preferred_element_type=jnp.float32)  # (TN, S)
    d = jnp.maximum(d, 0.0)            # guard cancellation for near-coincident points

    col = jax.lax.broadcasted_iota(jnp.int32, (1, S), 1)            # (1, S) row iota
    valid2 = col < len2_ref[b]                                       # mask padded xyz2
    row = t * TN + jax.lax.broadcasted_iota(jnp.int32, (TN, 1), 0)   # (TN, 1)
    row_valid = row < len1_ref[b]

    wmat = jnp.zeros((TN, S), jnp.float32)   # unnormalized 1/(d+eps) weights (sparse)
    wsum = jnp.zeros((TN, 1), jnp.float32)
    idx_cols = []

    if packed:
        # one XLU reduction per k: pack (truncated distance bits | column) into int32.
        keys = jnp.where(valid2,
                         (pltpu.bitcast(d, jnp.int32) & _KEY_HIGH) | col,
                         _KEY_SENTINEL)
        for _ in range(K):
            kmin = jnp.min(keys, axis=1, keepdims=True)              # (TN, 1)
            imin = kmin & _KEY_LOW
            finite = kmin < _KEY_INF
            dmin = pltpu.bitcast(kmin & _KEY_HIGH, jnp.float32)
            r = jnp.where(finite, pl.reciprocal(dmin + EPS_KNN, approx=True), 0.0)
            sel = col == imin
            wmat = wmat + jnp.where(sel, r, 0.0)
            wsum = wsum + r
            idx_cols.append(jnp.where(finite, imin, 0))
            keys = jnp.where(sel, _KEY_SENTINEL, keys)
    else:
        # fallback for S > 4096: two reductions per k (distance min + column argmin).
        dwork = jnp.where(valid2, d, jnp.inf)
        for _ in range(K):
            dmin = jnp.min(dwork, axis=1, keepdims=True)
            imin = jnp.min(jnp.where(dwork <= dmin, col, S), axis=1, keepdims=True)
            finite = dmin < jnp.inf
            r = jnp.where(finite, pl.reciprocal(dmin + EPS_KNN, approx=True), 0.0)
            sel = col == imin
            wmat = wmat + jnp.where(sel, r, 0.0)
            wsum = wsum + r
            idx_cols.append(jnp.where(finite, imin, 0))
            dwork = jnp.where(sel, jnp.inf, dwork)

    idx = jnp.concatenate(idx_cols, axis=1)                          # (TN, K)
    idx = jnp.where(row_valid, idx, 0)   # query rows beyond lengths1 -> idx 0 (pytorch3d)

    # padded query rows: full weight on column 0 -> interp = points2[b, 0] (reference-like)
    wmat = jnp.where(row_valid, wmat, (col == 0).astype(jnp.float32))
    wsum = jnp.where(row_valid, jnp.maximum(wsum, 1e-30), 1.0)

    # gather+blend as one sparse-weight matmul on the MXU, normalized afterwards
    interp = jnp.dot(wmat, pts2_ref[0], preferred_element_type=jnp.float32)
    interp = interp * pl.reciprocal(wsum, approx=True)               # EUP slot
    interp_ref[0] = interp.astype(interp_ref.dtype)
    idx_ref[0] = idx.astype(jnp.int32)


def knn_interpolate(xyz1, xyz2, points2, lengths1, lengths2, K, TN=128):
    B, N, _ = xyz1.shape
    _, S, D2 = points2.shape
    TN_eff = min(TN, _round_up(N, 8))
    N_pad = _round_up(N, TN_eff)
    D2_pad = _round_up(D2, 128)        # lane-dense interp stores

    xyz1 = xyz1.astype(jnp.float32)
    if N_pad != N:
        xyz1 = jnp.pad(xyz1, ((0, 0), (0, N_pad - N), (0, 0)))
    xyz2 = xyz2.astype(jnp.float32)

    # Augmented coordinates so that squared distances are one MXU matmul in-kernel:
    #   q_aug = [-2x, -2y, -2z, 1, |q|^2, 0, 0, 0]        (B, N_pad, 8)
    #   p_aug = [  x,   y,   z, |p|^2, 1, 0, 0, 0]^T      (B, 8, S)
    q_sq = jnp.sum(xyz1 * xyz1, axis=-1, keepdims=True)
    q_aug = jnp.concatenate(
        [-2.0 * xyz1, jnp.ones_like(q_sq), q_sq,
         jnp.zeros((B, N_pad, 3), jnp.float32)], axis=-1)
    p_sq = jnp.sum(xyz2 * xyz2, axis=-1, keepdims=True)
    p_aug = jnp.swapaxes(
        jnp.concatenate([xyz2, p_sq, jnp.ones_like(p_sq),
                         jnp.zeros((B, S, 3), jnp.float32)], axis=-1), 1, 2)

    points2 = points2.astype(jnp.float32)
    if D2_pad != D2:
        points2 = jnp.pad(points2, ((0, 0), (0, 0), (0, D2_pad - D2)))

    kernel = functools.partial(_knn_interp_kernel, K=K, TN=TN_eff, S=S,
                               packed=(S <= _KEY_LOW + 1))
    interp, idx = pl.pallas_call(
        kernel,
        out_shape=(jax.ShapeDtypeStruct((B, N_pad, D2_pad), jnp.float32),
                   jax.ShapeDtypeStruct((B, N_pad, K), jnp.int32)),
        grid_spec=pltpu.PrefetchScalarGridSpec(
            num_scalar_prefetch=2,
            grid=(B, N_pad // TN_eff),
            in_specs=[
                pl.BlockSpec((1, TN_eff, 8), lambda b, t, l1, l2: (b, t, 0)),
                pl.BlockSpec((1, 8, S), lambda b, t, l1, l2: (b, 0, 0)),
                pl.BlockSpec((1, S, D2_pad), lambda b, t, l1, l2: (b, 0, 0)),
            ],
            out_specs=[
                pl.BlockSpec((1, TN_eff, D2_pad), lambda b, t, l1, l2: (b, t, 0)),
                pl.BlockSpec((1, TN_eff, K), lambda b, t, l1, l2: (b, t, 0)),
            ],
        ),
        compiler_params=pltpu.CompilerParams(
            dimension_semantics=("parallel", "parallel"),
            vmem_limit_bytes=_vmem_limit_bytes()),
    )(lengths1, lengths2, q_aug, p_aug, points2)

    return interp[:, :N, :D2], idx[:, :N]


# ----------------------------------------------------------------------------
# Kernel 2: fused [BN(prev)+ReLU] -> 1x1 conv matmul -> masked channel stats
# ----------------------------------------------------------------------------
def _act_conv_stats_kernel(x_ref, w_ref, m_ref, scale_ref, shift_ref,
                           y_ref, stats_ref, *, apply_act):
    i = pl.program_id(1)

    @pl.when(i == 0)
    def _():
        stats_ref[...] = jnp.zeros_like(stats_ref)

    w = w_ref[...]
    x = x_ref[...]
    if apply_act:
        # previous layer's BN + ReLU applied on the fly (saves one HBM round trip)
        x = jnp.maximum(x.astype(jnp.float32) * scale_ref[...] + shift_ref[...], 0.0)
    y = jnp.dot(x.astype(w.dtype), w, preferred_element_type=jnp.float32)
    y_ref[...] = y.astype(y_ref.dtype)

    ym = y * m_ref[...]                                  # mask invalid points (f32)
    stats_ref[0:1, :] += jnp.sum(ym, axis=0, keepdims=True)        # sum
    stats_ref[1:2, :] += jnp.sum(ym * y, axis=0, keepdims=True)    # sum of squares


def conv1x1_act_stats(x, w, mask_col, scale, shift, *, apply_act, TM):
    Mp, Cin = x.shape
    Co = w.shape[1]
    assert Mp % TM == 0 and (Mp // TM) % 2 == 0, (Mp, TM)
    n_inner = (Mp // TM) // 2        # 2 outer "parallel" blocks -> both v7x TCs busy

    kernel = functools.partial(_act_conv_stats_kernel, apply_act=apply_act)
    row_map = lambda o, i: (o * n_inner + i, 0)
    bcast = lambda o, i: (0, 0)
    y, stats = pl.pallas_call(
        kernel,
        out_shape=(jax.ShapeDtypeStruct((Mp, Co), x.dtype),
                   jax.ShapeDtypeStruct((2, 2, Co), jnp.float32)),
        grid_spec=pltpu.PrefetchScalarGridSpec(
            num_scalar_prefetch=0,
            grid=(2, n_inner),
            in_specs=[
                pl.BlockSpec((TM, Cin), row_map),
                pl.BlockSpec((Cin, Co), bcast),
                pl.BlockSpec((TM, 1), row_map),
                pl.BlockSpec((1, Cin), bcast),
                pl.BlockSpec((1, Cin), bcast),
            ],
            out_specs=[
                pl.BlockSpec((TM, Co), row_map),
                pl.BlockSpec((None, 2, Co), lambda o, i: (o, 0, 0)),  # per-core partials
            ],
        ),
        compiler_params=pltpu.CompilerParams(
            dimension_semantics=("parallel", "arbitrary")),
    )(x, w, mask_col, scale, shift)
    return y, stats.sum(axis=0)       # reduce megacore partials -> (2, Co)


# ----------------------------------------------------------------------------
# Kernel 3: batch-norm (precomputed scale/shift) + ReLU epilogue
# ----------------------------------------------------------------------------
def _bn_relu_kernel(y_ref, scale_ref, shift_ref, o_ref):
    o_ref[...] = jnp.maximum(
        y_ref[...].astype(jnp.float32) * scale_ref[...] + shift_ref[...], 0.0)


def bn_relu(y, scale, shift, TM=512):
    # Note: input is bf16, output f32, so input_output_aliases cannot be used here.
    Mp, Co = y.shape
    TM_eff = TM if Mp % TM == 0 else _pick_tile(Mp, TM)
    return pl.pallas_call(
        _bn_relu_kernel,
        out_shape=jax.ShapeDtypeStruct((Mp, Co), jnp.float32),
        grid_spec=pltpu.PrefetchScalarGridSpec(
            num_scalar_prefetch=0,
            grid=(Mp // TM_eff,),
            in_specs=[
                pl.BlockSpec((TM_eff, Co), lambda i: (i, 0)),
                pl.BlockSpec((1, Co), lambda i: (0, 0)),
                pl.BlockSpec((1, Co), lambda i: (0, 0)),
            ],
            out_specs=pl.BlockSpec((TM_eff, Co), lambda i: (i, 0)),
        ),
        compiler_params=pltpu.CompilerParams(dimension_semantics=("parallel",)),
    )(y, scale, shift)


# ----------------------------------------------------------------------------
# Module wrapper (plain-JAX glue around the kernels)
# ----------------------------------------------------------------------------
def init_params(key, in_channel, mlp):
    """Deterministic synthetic params. Conv1d(last, co, 1, bias=False) weights
    stored channels-last as [C_in, C_out]; BN gamma=1, beta=0."""
    last = in_channel + 3          # pos_enc_module is None -> concat with points1
    params = []
    for co in mlp:
        key, sub = jax.random.split(key)
        bound = (1.0 / last) ** 0.5  # PyTorch Conv1d default U(-sqrt(k), sqrt(k))
        w = jax.random.uniform(sub, (last, co), jnp.float32, -bound, bound)
        params.append((w, jnp.ones((co,), jnp.float32), jnp.zeros((co,), jnp.float32)))
        last = co
    return params


def pointnet_feature_upsampling(params, xyz1, xyz2, points1, points2,
                                point_lens, embedding_lens, point_mask,
                                K=3, TM=512, activation_dtype=jnp.bfloat16):
    B, N, _ = xyz1.shape
    interp, idx = knn_interpolate(xyz1[..., :3], xyz2, points2,
                                  point_lens, embedding_lens, K)
    if points1 is not None and len(params) > 0:
        new_points = jnp.concatenate([points1.astype(jnp.float32), interp], axis=-1)
    else:
        new_points = interp
    if len(params) == 0:
        return new_points, idx

    M = B * N
    TM_eff = min(TM, _round_up(M, 16))      # multiple of 16 -> clean bf16 sublane tiling
    M_pad = _round_up(M, 2 * TM_eff)        # even row-block count -> 2 megacore partials

    Cin0 = new_points.shape[-1]
    Cin_pad = _round_up(Cin0, 128)          # lane-dense MXU contraction / stores
    h = new_points.reshape(M, Cin0)
    h = jnp.pad(h, ((0, M_pad - M), (0, Cin_pad - Cin0))).astype(activation_dtype)
    mask_col = point_mask.reshape(M, 1).astype(jnp.float32)
    mask_col = jnp.pad(mask_col, ((0, M_pad - M), (0, 0)))   # padded rows masked out
    n_valid = jnp.maximum(jnp.sum(mask_col), 1.0)

    # BN(prev layer)+ReLU is fused into the next layer's conv kernel; the standalone
    # bn_relu epilogue only runs once, after the last conv.
    scale = jnp.ones((1, Cin_pad), jnp.float32)
    shift = jnp.zeros((1, Cin_pad), jnp.float32)
    y = h
    last_pad = Cin_pad
    co_last = None
    for li, (w, gamma, beta) in enumerate(params):
        cin, co = w.shape
        co_pad = _round_up(co, 128)
        w_p = jnp.pad(w, ((0, last_pad - cin), (0, co_pad - co))).astype(activation_dtype)
        gamma_p = jnp.pad(gamma, (0, co_pad - co), constant_values=1.0)
        beta_p = jnp.pad(beta, (0, co_pad - co))

        y, stats = conv1x1_act_stats(y, w_p, mask_col, scale, shift,
                                     apply_act=(li > 0), TM=TM_eff)
        mean = stats[0] / n_valid
        var = jnp.maximum(stats[1] / n_valid - mean * mean, 0.0)
        # TODO(synk): MaskedBatchNorm1d source not provided; assumes training-mode masked
        # batch statistics (biased variance), normalization applied to every position
        # (mask only affects the statistics), no running-stat update.
        s = gamma_p / jnp.sqrt(var + BN_EPS)
        scale = s.reshape(1, -1)
        shift = (beta_p - mean * s).reshape(1, -1)
        last_pad = co_pad
        co_last = co

    out = bn_relu(y, scale, shift)
    return out[:M, :co_last].reshape(B, N, co_last), idx


if __name__ == "__main__":
    key = jax.random.PRNGKey(0)
    B, N, S, D2, K = 2, 16, 8, 8, 3
    mlp = [32, 16]

    k1, k2, k3, k4 = jax.random.split(key, 4)
    xyz1 = jax.random.normal(k1, (B, N, 3), jnp.float32)       # [B, N_max, 3]
    xyz2 = jax.random.normal(k2, (B, S, 3), jnp.float32)       # [B, S_max, 3]
    points1 = xyz1                                             # [B, N_max, D1=3]
    points2 = jax.random.normal(k3, (B, S, D2), jnp.float32)   # [B, S_max, D2]
    point_lens = jnp.array([16, 12], jnp.int32)
    embedding_lens = jnp.array([8, 6], jnp.int32)
    point_mask = jnp.arange(N)[None, :] < point_lens[:, None]  # [B, N_max] bool

    params = init_params(k4, in_channel=D2, mlp=mlp)

    fwd = jax.jit(functools.partial(pointnet_feature_upsampling, K=K))
    new_points, idx = fwd(params, xyz1, xyz2, points1, points2,
                          point_lens, embedding_lens, point_mask)
    jax.block_until_ready((new_points, idx))

    assert new_points.shape == (B, N, mlp[-1]), new_points.shape
    assert idx.shape == (B, N, K), idx.shape
    assert bool(jnp.all(jnp.isfinite(new_points))), "non-finite output"
    assert bool(jnp.all((idx >= 0) & (idx < S))), "idx out of range"
    print("KERNEL_OK")
</pallas_src>

<mosaic_0001>
module attributes {stable_mosaic.version = 11 : i64} {
  func.func @_knn_interp_kernel(%arg0: i32, %arg1: i32, %arg2: memref<2xi32, #tpu.memory_space<smem>>, %arg3: memref<2xi32, #tpu.memory_space<smem>>, %arg4: memref<1x16x8xf32, #tpu.memory_space<vmem>>, %arg5: memref<1x8x8xf32, #tpu.memory_space<vmem>>, %arg6: memref<1x8x128xf32, #tpu.memory_space<vmem>>, %arg7: memref<1x16x128xf32, #tpu.memory_space<vmem>>, %arg8: memref<1x16x3xi32, #tpu.memory_space<vmem>>) attributes {dimension_semantics = [#tpu.dimension_semantics<parallel>, #tpu.dimension_semantics<parallel>], iteration_bounds = array<i64: 2, 1>, scalar_prefetch = 2 : i64, scratch_operands = 0 : i64, tpu.core_type = #tpu.core_type<tc>, window_params = [{transform_indices = @transform_0, window_bounds = array<i64: 1, 16, 8>}, {transform_indices = @transform_1, window_bounds = array<i64: 1, 8, 8>}, {transform_indices = @transform_2, window_bounds = array<i64: 1, 8, 128>}, {transform_indices = @transform_3, window_bounds = array<i64: 1, 16, 128>}, {transform_indices = @transform_4, window_bounds = array<i64: 1, 16, 3>}]} {
    %c0 = arith.constant 0 : index
    %c0_0 = arith.constant 0 : index
    %c0_1 = arith.constant 0 : index
    %0 = vector.load %arg4[%c0, %c0_0, %c0_1] : memref<1x16x8xf32, #tpu.memory_space<vmem>>, vector<1x16x8xf32>
    %1 = vector.shape_cast %0 : vector<1x16x8xf32> to vector<16x8xf32>
    %c0_2 = arith.constant 0 : index
    %c0_3 = arith.constant 0 : index
    %c0_4 = arith.constant 0 : index
    %2 = vector.load %arg5[%c0_2, %c0_3, %c0_4] : memref<1x8x8xf32, #tpu.memory_space<vmem>>, vector<1x8x8xf32>
    %3 = vector.shape_cast %2 : vector<1x8x8xf32> to vector<8x8xf32>
    %cst = arith.constant dense<0.000000e+00> : vector<16x8xf32>
    %4 = tpu.matmul %1, %3, %cst {dimension_numbers = #tpu.dot_dimension_numbers<[1], [0], [0], [1], [0, 0, 1, 1], [], []>} : vector<16x8xf32>, vector<8x8xf32>, vector<16x8xf32> -> vector<16x8xf32>
    %cst_5 = arith.constant 0.000000e+00 : f32
    %5 = vector.broadcast %cst_5 : f32 to vector<16x8xf32>
    %6 = arith.maximumf %4, %5 : vector<16x8xf32>
    %7 = tpu.iota {dimensions = array<i32: 1>} : vector<1x8xi32>
    %8 = arith.index_cast %arg0 : i32 to index
    %9 = memref.load %arg3[%8] : memref<2xi32, #tpu.memory_space<smem>>
    %10 = vector.broadcast %9 : i32 to vector<1x8xi32>
    %11 = arith.cmpi slt, %7, %10 : vector<1x8xi32>
    %c16_i32 = arith.constant 16 : i32
    %12 = arith.muli %arg1, %c16_i32 : i32
    %13 = tpu.iota {dimensions = array<i32: 0>} : vector<16x1xi32>
    %14 = vector.broadcast %12 : i32 to vector<16x1xi32>
    %15 = arith.addi %14, %13 : vector<16x1xi32>
    %16 = arith.index_cast %arg0 : i32 to index
    %17 = memref.load %arg2[%16] : memref<2xi32, #tpu.memory_space<smem>>
    %18 = vector.broadcast %17 : i32 to vector<16x1xi32>
    %19 = arith.cmpi slt, %15, %18 : vector<16x1xi32>
    %cst_6 = arith.constant 0.000000e+00 : f32
    %20 = vector.broadcast %cst_6 : f32 to vector<16x8xf32>
    %cst_7 = arith.constant 0.000000e+00 : f32
    %21 = vector.broadcast %cst_7 : f32 to vector<16x1xf32>
    %22 = tpu.bitcast %6 : vector<16x8xf32> -> vector<16x8xi32>
    %c-4096_i32 = arith.constant -4096 : i32
    %23 = vector.broadcast %c-4096_i32 : i32 to vector<16x8xi32>
    %24 = arith.andi %22, %23 : vector<16x8xi32>
    %25 = vector.broadcast %7 : vector<1x8xi32> to vector<16x8xi32>
    %26 = arith.ori %24, %25 : vector<16x8xi32>
    %c2147483647_i32 = arith.constant 2147483647 : i32
    %27 = vector.shape_cast %11 : vector<1x8xi1> to vector<1x8xi1>
    %28 = vector.broadcast %27 : vector<1x8xi1> to vector<16x8xi1>
    %29 = vector.broadcast %c2147483647_i32 : i32 to vector<16x8xi32>
    %30 = arith.select %28, %26, %29 : vector<16x8xi1>, vector<16x8xi32>
    %cst_8 = arith.constant dense<2147483647> : vector<16xi32>
    %31 = vector.multi_reduction <minsi>, %30, %cst_8 [1] : vector<16x8xi32> to vector<16xi32>
    %32 = vector.shape_cast %31 : vector<16xi32> to vector<16x1xi32>
    %c4095_i32 = arith.constant 4095 : i32
    %33 = vector.broadcast %c4095_i32 : i32 to vector<16x1xi32>
    %34 = arith.andi %32, %33 : vector<16x1xi32>
    %c2139095040_i32 = arith.constant 2139095040 : i32
    %35 = vector.broadcast %c2139095040_i32 : i32 to vector<16x1xi32>
    %36 = arith.cmpi slt, %32, %35 : vector<16x1xi32>
    %c-4096_i32_9 = arith.constant -4096 : i32
    %37 = vector.broadcast %c-4096_i32_9 : i32 to vector<16x1xi32>
    %38 = arith.andi %32, %37 : vector<16x1xi32>
    %39 = tpu.bitcast %38 : vector<16x1xi32> -> vector<16x1xf32>
    %cst_10 = arith.constant 1.1920929E-7 : f32
    %40 = vector.broadcast %cst_10 : f32 to vector<16x1xf32>
    %41 = arith.addf %39, %40 : vector<16x1xf32>
    %42 = tpu.reciprocal %41 {approx = true} : vector<16x1xf32> -> vector<16x1xf32>
    %cst_11 = arith.constant 0.000000e+00 : f32
    %43 = vector.broadcast %cst_11 : f32 to vector<16x1xf32>
    %44 = arith.select %36, %42, %43 : vector<16x1xi1>, vector<16x1xf32>
    %45 = vector.broadcast %7 : vector<1x8xi32> to vector<16x8xi32>
    %46 = vector.broadcast %34 : vector<16x1xi32> to vector<16x8xi32>
    %47 = arith.cmpi eq, %45, %46 : vector<16x8xi32>
    %cst_12 = arith.constant 0.000000e+00 : f32
    %48 = vector.shape_cast %44 : vector<16x1xf32> to vector<16x1xf32>
    %49 = vector.broadcast %48 : vector<16x1xf32> to vector<16x8xf32>
    %50 = vector.broadcast %cst_12 : f32 to vector<16x8xf32>
    %51 = arith.select %47, %49, %50 : vector<16x8xi1>, vector<16x8xf32>
    %52 = arith.addf %20, %51 : vector<16x8xf32>
    %53 = arith.addf %21, %44 : vector<16x1xf32>
    %c0_i32 = arith.constant 0 : i32
    %54 = vector.broadcast %c0_i32 : i32 to vector<16x1xi32>
    %55 = arith.select %36, %34, %54 : vector<16x1xi1>, vector<16x1xi32>
    %c2147483647_i32_13 = arith.constant 2147483647 : i32
    %56 = vector.broadcast %c2147483647_i32_13 : i32 to vector<16x8xi32>
    %57 = arith.select %47, %56, %30 : vector<16x8xi1>, vector<16x8xi32>
    %cst_14 = arith.constant dense<2147483647> : vector<16xi32>
    %58 = vector.multi_reduction <minsi>, %57, %cst_14 [1] : vector<16x8xi32> to vector<16xi32>
    %59 = vector.shape_cast %58 : vector<16xi32> to vector<16x1xi32>
    %c4095_i32_15 = arith.constant 4095 : i32
    %60 = vector.broadcast %c4095_i32_15 : i32 to vector<16x1xi32>
    %61 = arith.andi %59, %60 : vector<16x1xi32>
    %c2139095040_i32_16 = arith.constant 2139095040 : i32
    %62 = vector.broadcast %c2139095040_i32_16 : i32 to vector<16x1xi32>
    %63 = arith.cmpi slt, %59, %62 : vector<16x1xi32>
    %c-4096_i32_17 = arith.constant -4096 : i32
    %64 = vector.broadcast %c-4096_i32_17 : i32 to vector<16x1xi32>
    %65 = arith.andi %59, %64 : vector<16x1xi32>
    %66 = tpu.bitcast %65 : vector<16x1xi32> -> vector<16x1xf32>
    %cst_18 = arith.constant 1.1920929E-7 : f32
    %67 = vector.broadcast %cst_18 : f32 to vector<16x1xf32>
    %68 = arith.addf %66, %67 : vector<16x1xf32>
    %69 = tpu.reciprocal %68 {approx = true} : vector<16x1xf32> -> vector<16x1xf32>
    %cst_19 = arith.constant 0.000000e+00 : f32
    %70 = vector.broadcast %cst_19 : f32 to vector<16x1xf32>
    %71 = arith.select %63, %69, %70 : vector<16x1xi1>, vector<16x1xf32>
    %72 = vector.broadcast %7 : vector<1x8xi32> to vector<16x8xi32>
    %73 = vector.broadcast %61 : vector<16x1xi32> to vector<16x8xi32>
    %74 = arith.cmpi eq, %72, %73 : vector<16x8xi32>
    %cst_20 = arith.constant 0.000000e+00 : f32
    %75 = vector.shape_cast %71 : vector<16x1xf32> to vector<16x1xf32>
    %76 = vector.broadcast %75 : vector<16x1xf32> to vector<16x8xf32>
    %77 = vector.broadcast %cst_20 : f32 to vector<16x8xf32>
    %78 = arith.select %74, %76, %77 : vector<16x8xi1>, vector<16x8xf32>
    %79 = arith.addf %52, %78 : vector<16x8xf32>
    %80 = arith.addf %53, %71 : vector<16x1xf32>
    %c0_i32_21 = arith.constant 0 : i32
    %81 = vector.broadcast %c0_i32_21 : i32 to vector<16x1xi32>
    %82 = arith.select %63, %61, %81 : vector<16x1xi1>, vector<16x1xi32>
    %c2147483647_i32_22 = arith.constant 2147483647 : i32
    %83 = vector.broadcast %c2147483647_i32_22 : i32 to vector<16x8xi32>
    %84 = arith.select %74, %83, %57 : vector<16x8xi1>, vector<16x8xi32>
    %cst_23 = arith.constant dense<2147483647> : vector<16xi32>
    %85 = vector.multi_reduction <minsi>, %84, %cst_23 [1] : vector<16x8xi32> to vector<16xi32>
    %86 = vector.shape_cast %85 : vector<16xi32> to vector<16x1xi32>
    %c4095_i32_24 = arith.constant 4095 : i32
    %87 = vector.broadcast %c4095_i32_24 : i32 to vector<16x1xi32>
    %88 = arith.andi %86, %87 : vector<16x1xi32>
    %c2139095040_i32_25 = arith.constant 2139095040 : i32
    %89 = vector.broadcast %c2139095040_i32_25 : i32 to vector<16x1xi32>
    %90 = arith.cmpi slt, %86, %89 : vector<16x1xi32>
    %c-4096_i32_26 = arith.constant -4096 : i32
    %91 = vector.broadcast %c-4096_i32_26 : i32 to vector<16x1xi32>
    %92 = arith.andi %86, %91 : vector<16x1xi32>
    %93 = tpu.bitcast %92 : vector<16x1xi32> -> vector<16x1xf32>
    %cst_27 = arith.constant 1.1920929E-7 : f32
    %94 = vector.broadcast %cst_27 : f32 to vector<16x1xf32>
    %95 = arith.addf %93, %94 : vector<16x1xf32>
    %96 = tpu.reciprocal %95 {approx = true} : vector<16x1xf32> -> vector<16x1xf32>
    %cst_28 = arith.constant 0.000000e+00 : f32
    %97 = vector.broadcast %cst_28 : f32 to vector<16x1xf32>
    %98 = arith.select %90, %96, %97 : vector<16x1xi1>, vector<16x1xf32>
    %99 = vector.broadcast %7 : vector<1x8xi32> to vector<16x8xi32>
    %100 = vector.broadcast %88 : vector<16x1xi32> to vector<16x8xi32>
    %101 = arith.cmpi eq, %99, %100 : vector<16x8xi32>
    %cst_29 = arith.constant 0.000000e+00 : f32
    %102 = vector.shape_cast %98 : vector<16x1xf32> to vector<16x1xf32>
    %103 = vector.broadcast %102 : vector<16x1xf32> to vector<16x8xf32>
    %104 = vector.broadcast %cst_29 : f32 to vector<16x8xf32>
    %105 = arith.select %101, %103, %104 : vector<16x8xi1>, vector<16x8xf32>
    %106 = arith.addf %79, %105 : vector<16x8xf32>
    %107 = arith.addf %80, %98 : vector<16x1xf32>
    %c0_i32_30 = arith.constant 0 : i32
    %108 = vector.broadcast %c0_i32_30 : i32 to vector<16x1xi32>
    %109 = arith.select %90, %88, %108 : vector<16x1xi1>, vector<16x1xi32>
    %110 = tpu.concatenate %55, %82, %109 in 1 : vector<16x1xi32>, vector<16x1xi32>, vector<16x1xi32> -> vector<16x3xi32>
    %c0_i32_31 = arith.constant 0 : i32
    %111 = vector.shape_cast %19 : vector<16x1xi1> to vector<16x1xi1>
    %112 = vector.broadcast %111 : vector<16x1xi1> to vector<16x3xi1>
    %113 = vector.broadcast %c0_i32_31 : i32 to vector<16x3xi32>
    %114 = arith.select %112, %110, %113 : vector<16x3xi1>, vector<16x3xi32>
    %c0_i32_32 = arith.constant 0 : i32
    %115 = vector.broadcast %c0_i32_32 : i32 to vector<1x8xi32>
    %116 = arith.cmpi eq, %7, %115 : vector<1x8xi32>
    %117 = arith.extui %116 : vector<1x8xi1> to vector<1x8xi32>
    %118 = arith.sitofp %117 : vector<1x8xi32> to vector<1x8xf32>
    %119 = vector.shape_cast %19 : vector<16x1xi1> to vector<16x1xi1>
    %120 = vector.broadcast %119 : vector<16x1xi1> to vector<16x8xi1>
    %121 = vector.shape_cast %118 : vector<1x8xf32> to vector<1x8xf32>
    %122 = vector.broadcast %121 : vector<1x8xf32> to vector<16x8xf32>
    %123 = arith.select %120, %106, %122 : vector<16x8xi1>, vector<16x8xf32>
    %cst_33 = arith.constant 1.000000e-30 : f32
    %124 = vector.broadcast %cst_33 : f32 to vector<16x1xf32>
    %125 = arith.maximumf %107, %124 : vector<16x1xf32>
    %cst_34 = arith.constant 1.000000e+00 : f32
    %126 = vector.broadcast %cst_34 : f32 to vector<16x1xf32>
    %127 = arith.select %19, %125, %126 : vector<16x1xi1>, vector<16x1xf32>
    %c0_35 = arith.constant 0 : index
    %c0_36 = arith.constant 0 : index
    %c0_37 = arith.constant 0 : index
    %128 = vector.load %arg6[%c0_35, %c0_36, %c0_37] : memref<1x8x128xf32, #tpu.memory_space<vmem>>, vector<1x8x128xf32>
    %129 = vector.shape_cast %128 : vector<1x8x128xf32> to vector<8x128xf32>
    %cst_38 = arith.constant dense<0.000000e+00> : vector<16x128xf32>
    %130 = tpu.matmul %123, %129, %cst_38 {dimension_numbers = #tpu.dot_dimension_numbers<[1], [0], [0], [1], [0, 0, 1, 1], [], []>} : vector<16x8xf32>, vector<8x128xf32>, vector<16x128xf32> -> vector<16x128xf32>
    %131 = tpu.reciprocal %127 {approx = true} : vector<16x1xf32> -> vector<16x1xf32>
    %132 = vector.broadcast %131 : vector<16x1xf32> to vector<16x128xf32>
    %133 = arith.mulf %130, %132 : vector<16x128xf32>
    %c0_39 = arith.constant 0 : index
    %c0_40 = arith.constant 0 : index
    %c0_41 = arith.constant 0 : index
    %134 = vector.load %arg7[%c0_39, %c0_40, %c0_41] : memref<1x16x128xf32, #tpu.memory_space<vmem>>, vector<1x16x128xf32>
    %135 = vector.shape_cast %134 : vector<1x16x128xf32> to vector<16x128xf32>
    %136 = vector.shape_cast %133 : vector<16x128xf32> to vector<1x16x128xf32>
    tpu.vector_store %arg7[%c0_39, %c0_40, %c0_41], %136 {strides = array<i32>} : memref<1x16x128xf32, #tpu.memory_space<vmem>>, vector<1x16x128xf32>,
    %c0_42 = arith.constant 0 : index
    %c0_43 = arith.constant 0 : index
    %c0_44 = arith.constant 0 : index
    %137 = vector.load %arg8[%c0_42, %c0_43, %c0_44] : memref<1x16x3xi32, #tpu.memory_space<vmem>>, vector<1x16x3xi32>
    %138 = vector.shape_cast %137 : vector<1x16x3xi32> to vector<16x3xi32>
    %139 = vector.shape_cast %114 : vector<16x3xi32> to vector<1x16x3xi32>
    tpu.vector_store %arg8[%c0_42, %c0_43, %c0_44], %139 {strides = array<i32>} : memref<1x16x3xi32, #tpu.memory_space<vmem>>, vector<1x16x3xi32>,
    return
  }
  func.func @transform_0(%arg0: i32, %arg1: i32, %arg2: memref<2xi32, #tpu.memory_space<smem>>, %arg3: memref<2xi32, #tpu.memory_space<smem>>) -> (i32, i32, i32) {
    %c0_i32 = arith.constant 0 : i32
    %c0_i32_0 = arith.constant 0 : i32
    return %arg0, %arg1, %c0_i32 : i32, i32, i32
  }
  func.func @transform_1(%arg0: i32, %arg1: i32, %arg2: memref<2xi32, #tpu.memory_space<smem>>, %arg3: memref<2xi32, #tpu.memory_space<smem>>) -> (i32, i32, i32) {
    %c0_i32 = arith.constant 0 : i32
    %c0_i32_0 = arith.constant 0 : i32
    %c0_i32_1 = arith.constant 0 : i32
    return %arg0, %c0_i32, %c0_i32_0 : i32, i32, i32
  }
  func.func @transform_2(%arg0: i32, %arg1: i32, %arg2: memref<2xi32, #tpu.memory_space<smem>>, %arg3: memref<2xi32, #tpu.memory_space<smem>>) -> (i32, i32, i32) {
    %c0_i32 = arith.constant 0 : i32
    %c0_i32_0 = arith.constant 0 : i32
    %c0_i32_1 = arith.constant 0 : i32
    return %arg0, %c0_i32, %c0_i32_0 : i32, i32, i32
  }
  func.func @transform_3(%arg0: i32, %arg1: i32, %arg2: memref<2xi32, #tpu.memory_space<smem>>, %arg3: memref<2xi32, #tpu.memory_space<smem>>) -> (i32, i32, i32) {
    %c0_i32 = arith.constant 0 : i32
    %c0_i32_0 = arith.constant 0 : i32
    return %arg0, %arg1, %c0_i32 : i32, i32, i32
  }
  func.func @transform_4(%arg0: i32, %arg1: i32, %arg2: memref<2xi32, #tpu.memory_space<smem>>, %arg3: memref<2xi32, #tpu.memory_space<smem>>) -> (i32, i32, i32) {
    %c0_i32 = arith.constant 0 : i32
    %c0_i32_0 = arith.constant 0 : i32
    return %arg0, %arg1, %c0_i32 : i32, i32, i32
  }
}

module attributes {stable_mosaic.version = 11 : i64} {
  func.func @_act_conv_stats_kernel(%arg0: i32, %arg1: i32, %arg2: memref<32x128xbf16, #tpu.memory_space<vmem>>, %arg3: memref<128x128xbf16, #tpu.memory_space<vmem>>, %arg4: memref<32x1xf32, #tpu.memory_space<vmem>>, %arg5: memref<1x128xf32, #tpu.memory_space<vmem>>, %arg6: memref<1x128xf32, #tpu.memory_space<vmem>>, %arg7: memref<32x128xbf16, #tpu.memory_space<vmem>>, %arg8: memref<1x2x128xf32, #tpu.memory_space<vmem>>) attributes {dimension_semantics = [#tpu.dimension_semantics<parallel>, #tpu.dimension_semantics<arbitrary>], iteration_bounds = array<i64: 2, 1>, scalar_prefetch = 0 : i64, scratch_operands = 0 : i64, tpu.core_type = #tpu.core_type<tc>, window_params = [{transform_indices = @transform_0, window_bounds = array<i64: 32, 128>}, {pipeline_mode = #tpu.pipeline_mode<synchronous>, transform_indices = @transform_1, window_bounds = array<i64: 128, 128>}, {transform_indices = @transform_2, window_bounds = array<i64: 32, 1>}, {pipeline_mode = #tpu.pipeline_mode<synchronous>, transform_indices = @transform_3, window_bounds = array<i64: 1, 128>}, {pipeline_mode = #tpu.pipeline_mode<synchronous>, transform_indices = @transform_4, window_bounds = array<i64: 1, 128>}, {transform_indices = @transform_5, window_bounds = array<i64: 32, 128>}, {transform_indices = @transform_6, window_bounds = array<i64: 1, 2, 128>}]} {
    %c0_i32 = arith.constant 0 : i32
    %0 = arith.cmpi eq, %arg1, %c0_i32 : i32
    %1 = arith.extui %0 : i1 to i32
    %c0_i32_0 = arith.constant 0 : i32
    %2 = arith.cmpi ne, %1, %c0_i32_0 : i32
    scf.if %2 {
      %cst_21 = arith.constant 0.000000e+00 : f32
      %28 = vector.broadcast %cst_21 : f32 to vector<2x128xf32>
      %c0_22 = arith.constant 0 : index
      %c0_23 = arith.constant 0 : index
      %c0_24 = arith.constant 0 : index
      %29 = vector.load %arg8[%c0_22, %c0_23, %c0_24] : memref<1x2x128xf32, #tpu.memory_space<vmem>>, vector<1x2x128xf32>
      %30 = vector.shape_cast %29 : vector<1x2x128xf32> to vector<2x128xf32>
      %31 = vector.shape_cast %28 : vector<2x128xf32> to vector<1x2x128xf32>
      tpu.vector_store %arg8[%c0_22, %c0_23, %c0_24], %31 {strides = array<i32>} : memref<1x2x128xf32, #tpu.memory_space<vmem>>, vector<1x2x128xf32>,
    } else {
    }
    %c0 = arith.constant 0 : index
    %c0_1 = arith.constant 0 : index
    %3 = vector.load %arg3[%c0, %c0_1] : memref<128x128xbf16, #tpu.memory_space<vmem>>, vector<128x128xbf16>
    %c0_2 = arith.constant 0 : index
    %c0_3 = arith.constant 0 : index
    %4 = vector.load %arg2[%c0_2, %c0_3] : memref<32x128xbf16, #tpu.memory_space<vmem>>, vector<32x128xbf16>
    %cst = arith.constant dense<0.000000e+00> : vector<32x128xf32>
    %5 = tpu.matmul %4, %3, %cst {dimension_numbers = #tpu.dot_dimension_numbers<[1], [0], [0], [1], [0, 0, 1, 1], [], []>} : vector<32x128xbf16>, vector<128x128xbf16>, vector<32x128xf32> -> vector<32x128xf32>
    %6 = arith.truncf %5 : vector<32x128xf32> to vector<32x128xbf16>
    %c0_4 = arith.constant 0 : index
    %c0_5 = arith.constant 0 : index
    %7 = vector.load %arg7[%c0_4, %c0_5] : memref<32x128xbf16, #tpu.memory_space<vmem>>, vector<32x128xbf16>
    tpu.vector_store %arg7[%c0_4, %c0_5], %6 {strides = array<i32>} : memref<32x128xbf16, #tpu.memory_space<vmem>>, vector<32x128xbf16>,
    %c0_6 = arith.constant 0 : index
    %c0_7 = arith.constant 0 : index
    %8 = vector.load %arg4[%c0_6, %c0_7] : memref<32x1xf32, #tpu.memory_space<vmem>>, vector<32x1xf32>
    %9 = vector.broadcast %8 : vector<32x1xf32> to vector<32x128xf32>
    %10 = arith.mulf %5, %9 : vector<32x128xf32>
    %c0_8 = arith.constant 0 : index
    %c0_9 = arith.constant 0 : index
    %c0_10 = arith.constant 0 : index
    %11 = vector.load %arg8[%c0_8, %c0_9, %c0_10] : memref<1x2x128xf32, #tpu.memory_space<vmem>>, vector<1x1x128xf32>
    %12 = vector.shape_cast %11 : vector<1x1x128xf32> to vector<1x128xf32>
    %cst_11 = arith.constant dense<0.000000e+00> : vector<128xf32>
    %13 = vector.multi_reduction <add>, %10, %cst_11 [0] : vector<32x128xf32> to vector<128xf32>
    %14 = vector.shape_cast %13 : vector<128xf32> to vector<1x128xf32>
    %15 = arith.addf %12, %14 : vector<1x128xf32>
    %c0_12 = arith.constant 0 : index
    %c0_13 = arith.constant 0 : index
    %c0_14 = arith.constant 0 : index
    %16 = vector.load %arg8[%c0_12, %c0_13, %c0_14] : memref<1x2x128xf32, #tpu.memory_space<vmem>>, vector<1x1x128xf32>
    %17 = vector.shape_cast %16 : vector<1x1x128xf32> to vector<1x128xf32>
    %18 = vector.shape_cast %15 : vector<1x128xf32> to vector<1x1x128xf32>
    tpu.vector_store %arg8[%c0_12, %c0_13, %c0_14], %18 {strides = array<i32>} : memref<1x2x128xf32, #tpu.memory_space<vmem>>, vector<1x1x128xf32>,
    %c0_15 = arith.constant 0 : index
    %c1 = arith.constant 1 : index
    %c0_16 = arith.constant 0 : index
    %19 = vector.load %arg8[%c0_15, %c1, %c0_16] : memref<1x2x128xf32, #tpu.memory_space<vmem>>, vector<1x1x128xf32>
    %20 = vector.shape_cast %19 : vector<1x1x128xf32> to vector<1x128xf32>
    %21 = arith.mulf %10, %5 : vector<32x128xf32>
    %cst_17 = arith.constant dense<0.000000e+00> : vector<128xf32>
    %22 = vector.multi_reduction <add>, %21, %cst_17 [0] : vector<32x128xf32> to vector<128xf32>
    %23 = vector.shape_cast %22 : vector<128xf32> to vector<1x128xf32>
    %24 = arith.addf %20, %23 : vector<1x128xf32>
    %c0_18 = arith.constant 0 : index
    %c1_19 = arith.constant 1 : index
    %c0_20 = arith.constant 0 : index
    %25 = vector.load %arg8[%c0_18, %c1_19, %c0_20] : memref<1x2x128xf32, #tpu.memory_space<vmem>>, vector<1x1x128xf32>
    %26 = vector.shape_cast %25 : vector<1x1x128xf32> to vector<1x128xf32>
    %27 = vector.shape_cast %24 : vector<1x128xf32> to vector<1x1x128xf32>
    tpu.vector_store %arg8[%c0_18, %c1_19, %c0_20], %27 {strides = array<i32>} : memref<1x2x128xf32, #tpu.memory_space<vmem>>, vector<1x1x128xf32>,
    return
  }
  func.func @transform_0(%arg0: i32, %arg1: i32) -> (i32, i32) {
    %c1_i32 = arith.constant 1 : i32
    %0 = arith.muli %arg0, %c1_i32 : i32
    %1 = arith.addi %0, %arg1 : i32
    %c0_i32 = arith.constant 0 : i32
    %c0_i32_0 = arith.constant 0 : i32
    return %1, %c0_i32 : i32, i32
  }
  func.func @transform_1(%arg0: i32, %arg1: i32) -> (i32, i32) {
    %c0_i32 = arith.constant 0 : i32
    %c0_i32_0 = arith.constant 0 : i32
    %c0_i32_1 = arith.constant 0 : i32
    return %c0_i32, %c0_i32_0 : i32, i32
  }
  func.func @transform_2(%arg0: i32, %arg1: i32) -> (i32, i32) {
    %c1_i32 = arith.constant 1 : i32
    %0 = arith.muli %arg0, %c1_i32 : i32
    %1 = arith.addi %0, %arg1 : i32
    %c0_i32 = arith.constant 0 : i32
    %c0_i32_0 = arith.constant 0 : i32
    return %1, %c0_i32 : i32, i32
  }
  func.func @transform_3(%arg0: i32, %arg1: i32) -> (i32, i32) {
    %c0_i32 = arith.constant 0 : i32
    %c0_i32_0 = arith.constant 0 : i32
    %c0_i32_1 = arith.constant 0 : i32
    return %c0_i32, %c0_i32_0 : i32, i32
  }
  func.func @transform_4(%arg0: i32, %arg1: i32) -> (i32, i32) {
    %c0_i32 = arith.constant 0 : i32
    %c0_i32_0 = arith.constant 0 : i32
    %c0_i32_1 = arith.constant 0 : i32
    return %c0_i32, %c0_i32_0 : i32, i32
  }
  func.func @transform_5(%arg0: i32, %arg1: i32) -> (i32, i32) {
    %c1_i32 = arith.constant 1 : i32
    %0 = arith.muli %arg0, %c1_i32 : i32
    %1 = arith.addi %0, %arg1 : i32
    %c0_i32 = arith.constant 0 : i32
    %c0_i32_0 = arith.constant 0 : i32
    return %1, %c0_i32 : i32, i32
  }
  func.func @transform_6(%arg0: i32, %arg1: i32) -> (i32, i32, i32) {
    %c0_i32 = arith.constant 0 : i32
    %c0_i32_0 = arith.constant 0 : i32
    %c0_i32_1 = arith.constant 0 : i32
    return %arg0, %c0_i32, %c0_i32_0 : i32, i32, i32
  }
}

module attributes {stable_mosaic.version = 11 : i64} {
  func.func @_act_conv_stats_kernel(%arg0: i32, %arg1: i32, %arg2: memref<32x128xbf16, #tpu.memory_space<vmem>>, %arg3: memref<128x128xbf16, #tpu.memory_space<vmem>>, %arg4: memref<32x1xf32, #tpu.memory_space<vmem>>, %arg5: memref<1x128xf32, #tpu.memory_space<vmem>>, %arg6: memref<1x128xf32, #tpu.memory_space<vmem>>, %arg7: memref<32x128xbf16, #tpu.memory_space<vmem>>, %arg8: memref<1x2x128xf32, #tpu.memory_space<vmem>>) attributes {dimension_semantics = [#tpu.dimension_semantics<parallel>, #tpu.dimension_semantics<arbitrary>], iteration_bounds = array<i64: 2, 1>, scalar_prefetch = 0 : i64, scratch_operands = 0 : i64, tpu.core_type = #tpu.core_type<tc>, window_params = [{transform_indices = @transform_0, window_bounds = array<i64: 32, 128>}, {pipeline_mode = #tpu.pipeline_mode<synchronous>, transform_indices = @transform_1, window_bounds = array<i64: 128, 128>}, {transform_indices = @transform_2, window_bounds = array<i64: 32, 1>}, {pipeline_mode = #tpu.pipeline_mode<synchronous>, transform_indices = @transform_3, window_bounds = array<i64: 1, 128>}, {pipeline_mode = #tpu.pipeline_mode<synchronous>, transform_indices = @transform_4, window_bounds = array<i64: 1, 128>}, {transform_indices = @transform_5, window_bounds = array<i64: 32, 128>}, {transform_indices = @transform_6, window_bounds = array<i64: 1, 2, 128>}]} {
    %c0_i32 = arith.constant 0 : i32
    %0 = arith.cmpi eq, %arg1, %c0_i32 : i32
    %1 = arith.extui %0 : i1 to i32
    %c0_i32_0 = arith.constant 0 : i32
    %2 = arith.cmpi ne, %1, %c0_i32_0 : i32
    scf.if %2 {
      %cst_26 = arith.constant 0.000000e+00 : f32
      %38 = vector.broadcast %cst_26 : f32 to vector<2x128xf32>
      %c0_27 = arith.constant 0 : index
      %c0_28 = arith.constant 0 : index
      %c0_29 = arith.constant 0 : index
      %39 = vector.load %arg8[%c0_27, %c0_28, %c0_29] : memref<1x2x128xf32, #tpu.memory_space<vmem>>, vector<1x2x128xf32>
      %40 = vector.shape_cast %39 : vector<1x2x128xf32> to vector<2x128xf32>
      %41 = vector.shape_cast %38 : vector<2x128xf32> to vector<1x2x128xf32>
      tpu.vector_store %arg8[%c0_27, %c0_28, %c0_29], %41 {strides = array<i32>} : memref<1x2x128xf32, #tpu.memory_space<vmem>>, vector<1x2x128xf32>,
    } else {
    }
    %c0 = arith.constant 0 : index
    %c0_1 = arith.constant 0 : index
    %3 = vector.load %arg3[%c0, %c0_1] : memref<128x128xbf16, #tpu.memory_space<vmem>>, vector<128x128xbf16>
    %c0_2 = arith.constant 0 : index
    %c0_3 = arith.constant 0 : index
    %4 = vector.load %arg2[%c0_2, %c0_3] : memref<32x128xbf16, #tpu.memory_space<vmem>>, vector<32x128xbf16>
    %5 = arith.extf %4 : vector<32x128xbf16> to vector<32x128xf32>
    %c0_4 = arith.constant 0 : index
    %c0_5 = arith.constant 0 : index
    %6 = vector.load %arg5[%c0_4, %c0_5] : memref<1x128xf32, #tpu.memory_space<vmem>>, vector<1x128xf32>
    %7 = vector.broadcast %6 : vector<1x128xf32> to vector<32x128xf32>
    %8 = arith.mulf %5, %7 : vector<32x128xf32>
    %c0_6 = arith.constant 0 : index
    %c0_7 = arith.constant 0 : index
    %9 = vector.load %arg6[%c0_6, %c0_7] : memref<1x128xf32, #tpu.memory_space<vmem>>, vector<1x128xf32>
    %10 = vector.broadcast %9 : vector<1x128xf32> to vector<32x128xf32>
    %11 = arith.addf %8, %10 : vector<32x128xf32>
    %cst = arith.constant 0.000000e+00 : f32
    %12 = vector.broadcast %cst : f32 to vector<32x128xf32>
    %13 = arith.maximumf %11, %12 : vector<32x128xf32>
    %14 = arith.truncf %13 : vector<32x128xf32> to vector<32x128xbf16>
    %cst_8 = arith.constant dense<0.000000e+00> : vector<32x128xf32>
    %15 = tpu.matmul %14, %3, %cst_8 {dimension_numbers = #tpu.dot_dimension_numbers<[1], [0], [0], [1], [0, 0, 1, 1], [], []>} : vector<32x128xbf16>, vector<128x128xbf16>, vector<32x128xf32> -> vector<32x128xf32>
    %16 = arith.truncf %15 : vector<32x128xf32> to vector<32x128xbf16>
    %c0_9 = arith.constant 0 : index
    %c0_10 = arith.constant 0 : index
    %17 = vector.load %arg7[%c0_9, %c0_10] : memref<32x128xbf16, #tpu.memory_space<vmem>>, vector<32x128xbf16>
    tpu.vector_store %arg7[%c0_9, %c0_10], %16 {strides = array<i32>} : memref<32x128xbf16, #tpu.memory_space<vmem>>, vector<32x128xbf16>,
    %c0_11 = arith.constant 0 : index
    %c0_12 = arith.constant 0 : index
    %18 = vector.load %arg4[%c0_11, %c0_12] : memref<32x1xf32, #tpu.memory_space<vmem>>, vector<32x1xf32>
    %19 = vector.broadcast %18 : vector<32x1xf32> to vector<32x128xf32>
    %20 = arith.mulf %15, %19 : vector<32x128xf32>
    %c0_13 = arith.constant 0 : index
    %c0_14 = arith.constant 0 : index
    %c0_15 = arith.constant 0 : index
    %21 = vector.load %arg8[%c0_13, %c0_14, %c0_15] : memref<1x2x128xf32, #tpu.memory_space<vmem>>, vector<1x1x128xf32>
    %22 = vector.shape_cast %21 : vector<1x1x128xf32> to vector<1x128xf32>
    %cst_16 = arith.constant dense<0.000000e+00> : vector<128xf32>
    %23 = vector.multi_reduction <add>, %20, %cst_16 [0] : vector<32x128xf32> to vector<128xf32>
    %24 = vector.shape_cast %23 : vector<128xf32> to vector<1x128xf32>
    %25 = arith.addf %22, %24 : vector<1x128xf32>
    %c0_17 = arith.constant 0 : index
    %c0_18 = arith.constant 0 : index
    %c0_19 = arith.constant 0 : index
    %26 = vector.load %arg8[%c0_17, %c0_18, %c0_19] : memref<1x2x128xf32, #tpu.memory_space<vmem>>, vector<1x1x128xf32>
    %27 = vector.shape_cast %26 : vector<1x1x128xf32> to vector<1x128xf32>
    %28 = vector.shape_cast %25 : vector<1x128xf32> to vector<1x1x128xf32>
    tpu.vector_store %arg8[%c0_17, %c0_18, %c0_19], %28 {strides = array<i32>} : memref<1x2x128xf32, #tpu.memory_space<vmem>>, vector<1x1x128xf32>,
    %c0_20 = arith.constant 0 : index
    %c1 = arith.constant 1 : index
    %c0_21 = arith.constant 0 : index
    %29 = vector.load %arg8[%c0_20, %c1, %c0_21] : memref<1x2x128xf32, #tpu.memory_space<vmem>>, vector<1x1x128xf32>
    %30 = vector.shape_cast %29 : vector<1x1x128xf32> to vector<1x128xf32>
    %31 = arith.mulf %20, %15 : vector<32x128xf32>
    %cst_22 = arith.constant dense<0.000000e+00> : vector<128xf32>
    %32 = vector.multi_reduction <add>, %31, %cst_22 [0] : vector<32x128xf32> to vector<128xf32>
    %33 = vector.shape_cast %32 : vector<128xf32> to vector<1x128xf32>
    %34 = arith.addf %30, %33 : vector<1x128xf32>
    %c0_23 = arith.constant 0 : index
    %c1_24 = arith.constant 1 : index
    %c0_25 = arith.constant 0 : index
    %35 = vector.load %arg8[%c0_23, %c1_24, %c0_25] : memref<1x2x128xf32, #tpu.memory_space<vmem>>, vector<1x1x128xf32>
    %36 = vector.shape_cast %35 : vector<1x1x128xf32> to vector<1x128xf32>
    %37 = vector.shape_cast %34 : vector<1x128xf32> to vector<1x1x128xf32>
    tpu.vector_store %arg8[%c0_23, %c1_24, %c0_25], %37 {strides = array<i32>} : memref<1x2x128xf32, #tpu.memory_space<vmem>>, vector<1x1x128xf32>,
    return
  }
  func.func @transform_0(%arg0: i32, %arg1: i32) -> (i32, i32) {
    %c1_i32 = arith.constant 1 : i32
    %0 = arith.muli %arg0, %c1_i32 : i32
    %1 = arith.addi %0, %arg1 : i32
    %c0_i32 = arith.constant 0 : i32
    %c0_i32_0 = arith.constant 0 : i32
    return %1, %c0_i32 : i32, i32
  }
  func.func @transform_1(%arg0: i32, %arg1: i32) -> (i32, i32) {
    %c0_i32 = arith.constant 0 : i32
    %c0_i32_0 = arith.constant 0 : i32
    %c0_i32_1 = arith.constant 0 : i32
    return %c0_i32, %c0_i32_0 : i32, i32
  }
  func.func @transform_2(%arg0: i32, %arg1: i32) -> (i32, i32) {
    %c1_i32 = arith.constant 1 : i32
    %0 = arith.muli %arg0, %c1_i32 : i32
    %1 = arith.addi %0, %arg1 : i32
    %c0_i32 = arith.constant 0 : i32
    %c0_i32_0 = arith.constant 0 : i32
    return %1, %c0_i32 : i32, i32
  }
  func.func @transform_3(%arg0: i32, %arg1: i32) -> (i32, i32) {
    %c0_i32 = arith.constant 0 : i32
    %c0_i32_0 = arith.constant 0 : i32
    %c0_i32_1 = arith.constant 0 : i32
    return %c0_i32, %c0_i32_0 : i32, i32
  }
  func.func @transform_4(%arg0: i32, %arg1: i32) -> (i32, i32) {
    %c0_i32 = arith.constant 0 : i32
    %c0_i32_0 = arith.constant 0 : i32
    %c0_i32_1 = arith.constant 0 : i32
    return %c0_i32, %c0_i32_0 : i32, i32
  }
  func.func @transform_5(%arg0: i32, %arg1: i32) -> (i32, i32) {
    %c1_i32 = arith.constant 1 : i32
    %0 = arith.muli %arg0, %c1_i32 : i32
    %1 = arith.addi %0, %arg1 : i32
    %c0_i32 = arith.constant 0 : i32
    %c0_i32_0 = arith.constant 0 : i32
    return %1, %c0_i32 : i32, i32
  }
  func.func @transform_6(%arg0: i32, %arg1: i32) -> (i32, i32, i32) {
    %c0_i32 = arith.constant 0 : i32
    %c0_i32_0 = arith.constant 0 : i32
    %c0_i32_1 = arith.constant 0 : i32
    return %arg0, %c0_i32, %c0_i32_0 : i32, i32, i32
  }
}

module attributes {stable_mosaic.version = 11 : i64} {
  func.func @_bn_relu_kernel(%arg0: i32, %arg1: memref<64x128xbf16, #tpu.memory_space<vmem>>, %arg2: memref<1x128xf32, #tpu.memory_space<vmem>>, %arg3: memref<1x128xf32, #tpu.memory_space<vmem>>, %arg4: memref<64x128xf32, #tpu.memory_space<vmem>>) attributes {dimension_semantics = [#tpu.dimension_semantics<parallel>], iteration_bounds = array<i64: 1>, scalar_prefetch = 0 : i64, scratch_operands = 0 : i64, tpu.core_type = #tpu.core_type<tc>, window_params = [{transform_indices = @transform_0, window_bounds = array<i64: 64, 128>}, {pipeline_mode = #tpu.pipeline_mode<synchronous>, transform_indices = @transform_1, window_bounds = array<i64: 1, 128>}, {pipeline_mode = #tpu.pipeline_mode<synchronous>, transform_indices = @transform_2, window_bounds = array<i64: 1, 128>}, {transform_indices = @transform_3, window_bounds = array<i64: 64, 128>}]} {
    %c0 = arith.constant 0 : index
    %c0_0 = arith.constant 0 : index
    %0 = vector.load %arg1[%c0, %c0_0] : memref<64x128xbf16, #tpu.memory_space<vmem>>, vector<64x128xbf16>
    %1 = arith.extf %0 : vector<64x128xbf16> to vector<64x128xf32>
    %c0_1 = arith.constant 0 : index
    %c0_2 = arith.constant 0 : index
    %2 = vector.load %arg2[%c0_1, %c0_2] : memref<1x128xf32, #tpu.memory_space<vmem>>, vector<1x128xf32>
    %3 = vector.broadcast %2 : vector<1x128xf32> to vector<64x128xf32>
    %4 = arith.mulf %1, %3 : vector<64x128xf32>
    %c0_3 = arith.constant 0 : index
    %c0_4 = arith.constant 0 : index
    %5 = vector.load %arg3[%c0_3, %c0_4] : memref<1x128xf32, #tpu.memory_space<vmem>>, vector<1x128xf32>
    %6 = vector.broadcast %5 : vector<1x128xf32> to vector<64x128xf32>
    %7 = arith.addf %4, %6 : vector<64x128xf32>
    %cst = arith.constant 0.000000e+00 : f32
    %8 = vector.broadcast %cst : f32 to vector<64x128xf32>
    %9 = arith.maximumf %7, %8 : vector<64x128xf32>
    %c0_5 = arith.constant 0 : index
    %c0_6 = arith.constant 0 : index
    %10 = vector.load %arg4[%c0_5, %c0_6] : memref<64x128xf32, #tpu.memory_space<vmem>>, vector<64x128xf32>
    tpu.vector_store %arg4[%c0_5, %c0_6], %9 {strides = array<i32>} : memref<64x128xf32, #tpu.memory_space<vmem>>, vector<64x128xf32>,
    return
  }
  func.func @transform_0(%arg0: i32) -> (i32, i32) {
    %c0_i32 = arith.constant 0 : i32
    %c0_i32_0 = arith.constant 0 : i32
    return %arg0, %c0_i32 : i32, i32
  }
  func.func @transform_1(%arg0: i32) -> (i32, i32) {
    %c0_i32 = arith.constant 0 : i32
    %c0_i32_0 = arith.constant 0 : i32
    %c0_i32_1 = arith.constant 0 : i32
    return %c0_i32, %c0_i32_0 : i32, i32
  }
  func.func @transform_2(%arg0: i32) -> (i32, i32) {
    %c0_i32 = arith.constant 0 : i32
    %c0_i32_0 = arith.constant 0 : i32
    %c0_i32_1 = arith.constant 0 : i32
    return %c0_i32, %c0_i32_0 : i32, i32
  }
  func.func @transform_3(%arg0: i32) -> (i32, i32) {
    %c0_i32 = arith.constant 0 : i32
    %c0_i32_0 = arith.constant 0 : i32
    return %arg0, %c0_i32 : i32, i32
  }
}

</mosaic_0001>

<bundles_post_ra>
// kernel: pointnet_feature_upsampling.7
= control target key start
LH: loop header
LB: loop body
LE: loop exit
PB: predicated region body
PF: predicated region fallthrough
CT: control target
= control target key end

     0   :  { %s163_s0 = inlined_call_operand.vmem [shape: bf16[64,128], index: 0, kind: input, shape index: {}]   ;;  %s164_s1 = inlined_call_operand.vmem [shape: f32[1,128], index: 1, kind: input, shape index: {}]   ;;  %s165_s2 = inlined_call_operand.vmem [shape: f32[1,128], index: 2, kind: input, shape index: {}]   ;;  %s166_s3 = inlined_call_operand.vmem [shape: f32[64,128], index: 3, kind: output, shape index: {}]  }
   0x1   :  { %v83_v0 = vld [vmem:[%s163_s0] sm:$0xff]   ;;  %v98_v4 = vld [vmem:[%s163_s0 + $0x8] sm:$0xff]   ;;  %v99_v5 = vld [vmem:[%s163_s0 + $0x10] sm:$0xff]  }
   0x2   :  { %v80_v1 = vld [vmem:[%s164_s1] ss:$0 sm:$0xff]  ;;  %v84_v2 = vunpack.c.l.bf16 %v83_v0  ;;  %v85_v3 = vunpack.c.h.bf16 %v83_v0  ;;  %v100_v6 = vld [vmem:[%s163_s0 + $0x18] sm:$0xff]   ;;  %v88_v8 = vunpack.c.l.bf16 %v98_v4  ;;  %v89_v9 = vunpack.c.h.bf16 %v98_v4 }
   0x3   :  { %v81_v7 = vld [vmem:[%s165_s2] ss:$0 sm:$0xff]  ;;  %v92_v10 = vunpack.c.l.bf16 %v99_v5  ;;  %v93_v11 = vunpack.c.h.bf16 %v99_v5  ;;  %v96_v14 = vunpack.c.l.bf16 %v100_v6  ;;  %v97_v15 = vunpack.c.h.bf16 %v100_v6 }
   0x4   :  { %v37_v12 = vmul.f32 %v84_v2, %v80_v1  ;;  %v38_v13 = vmul.f32 %v85_v3, %v80_v1  ;;  %v39_v16 = vmul.f32 %v88_v8, %v80_v1  ;;  %v40_v17 = vmul.f32 %v89_v9, %v80_v1 }
   0x5   :  { %v41_v18 = vmul.f32 %v92_v10, %v80_v1  ;;  %v42_v19 = vmul.f32 %v93_v11, %v80_v1  ;;  %v43_v22 = vmul.f32 %v96_v14, %v80_v1  ;;  %v44_v23 = vmul.f32 %v97_v15, %v80_v1 }
   0x6   :  { %v52_v20 = vadd.f32 %v81_v7, %v37_v12  ;;  %v53_v21 = vadd.f32 %v81_v7, %v38_v13  ;;  %v54_v24 = vadd.f32 %v81_v7, %v39_v16  ;;  %v55_v25 = vadd.f32 %v81_v7, %v40_v17 }
   0x7   :  { %v56_v26 = vadd.f32 %v81_v7, %v41_v18  ;;  %v57_v27 = vadd.f32 %v81_v7, %v42_v19  ;;  %v58_v30 = vadd.f32 %v81_v7, %v43_v22  ;;  %v59_v31 = vadd.f32 %v81_v7, %v44_v23 }
   0x8   :  { %v60_v28 = vmax.f32 %v52_v20, 0.0  ;;  %v61_v29 = vmax.f32 %v53_v21, 0.0  ;;  %v62_v32 = vmax.f32 %v54_v24, 0.0  ;;  %v63_v33 = vmax.f32 %v55_v25, 0.0 }
   0x9   :  { %v64_v34 = vmax.f32 %v56_v26, 0.0  ;;  %v65_v35 = vmax.f32 %v57_v27, 0.0  ;;  %v66_v36 = vmax.f32 %v58_v30, 0.0  ;;  %v67_v37 = vmax.f32 %v59_v31, 0.0 }
   0xa   :  { %68 = vst [vmem:[%s166_s3] sm:$0xff] %v60_v28  ;;  %69 = vst [vmem:[%s166_s3 + $0x8] sm:$0xff] %v61_v29 }
   0xb   :  { %70 = vst [vmem:[%s166_s3 + $0x10] sm:$0xff] %v62_v32  ;;  %71 = vst [vmem:[%s166_s3 + $0x18] sm:$0xff] %v63_v33 }
   0xc   :  { %72 = vst [vmem:[%s166_s3 + $0x20] sm:$0xff] %v64_v34  ;;  %73 = vst [vmem:[%s166_s3 + $0x28] sm:$0xff] %v65_v35 }
   0xd   :  { %74 = vst [vmem:[%s166_s3 + $0x30] sm:$0xff] %v66_v36  ;;  %75 = vst [vmem:[%s166_s3 + $0x38] sm:$0xff] %v67_v37 }

// kernel: pointnet_feature_upsampling.4
= control target key start
LH: loop header
LB: loop body
LE: loop exit
PB: predicated region body
PF: predicated region fallthrough
CT: control target
= control target key end

     0   :  { %s1827_s0 = inlined_call_operand.hbm [shape: s32[2], index: 0, kind: input, shape index: {}]   ;;  %s1828_s2 = inlined_call_operand.hbm [shape: f32[2,16,8], index: 2, kind: input, shape index: {}]   ;;  %s1829_s3 = inlined_call_operand.hbm [shape: f32[2,8,8], index: 3, kind: input, shape index: {}]   ;;  %s1830_s4 = inlined_call_operand.hbm [shape: f32[2,8,128], index: 4, kind: input, shape index: {}]   ;;  %s1831_s5 = inlined_call_operand.hbm [shape: f32[2,16,128], index: 5, kind: output, shape index: {0}]   ;;  %s1832_s6 = inlined_call_operand.hbm [shape: s32[2,16,3], index: 6, kind: output, shape index: {1}]   ;;  %s1833_s1 = inlined_call_operand.hbm [shape: s32[2], index: 1, kind: input, shape index: {}]  }
   0x1   :  { %1841 = sst [smem:[#allocation23_spill]] %s1828_s2  ;;  %s1073_s23 = scalar_lea.hbm %s1827_s0, 16 }
   0x2   :  { %1842 = sst [smem:[#allocation24_spill]] %s1829_s3  ;;  %p1074_p0 = scmp.ne.s32.totalorder %s1827_s0, %s1073_s23 }
   0x3   :  { %p1077_p1 = scmp.lt.u32.totalorder %s1073_s23, %s1827_s0 }
   0x5   :  { %p1079_p2 = pnand %p1077_p1, %p1074_p0 }
   0x7   :  { %1082 = shalt.err (!%p1079_p2)  }
   0x8   :  { %s1305_s28 = smov [#allocation3]   ;;  %s1083_s9 = scalar_lea.hbm %s1833_s1, 16 }
   0x9   :  { %13 = dma.hbm_to_smem %s1827_s0, 16, %s1305_s28, [#allocation2] }
   0xa   :  { %p1084_p3 = scmp.ne.s32.totalorder %s1833_s1, %s1083_s9  ;;  %p1087_p4 = scmp.lt.u32.totalorder %s1083_s9, %s1833_s1 }
   0xc   :  { %p1089_p5 = pnand %p1087_p4, %p1084_p3 }
   0xe   :  { %1092 = shalt.err (!%p1089_p5)  }
   0xf   :  { %s1306_s14 = smov [#allocation4]  }
  0x10   :  { %15 = dma.hbm_to_smem %s1833_s1, 16, %s1306_s14, [#allocation2] }
  0x11   :  { %1263 = dma.done.wait [#allocation2], 32 }
  0x12   :  { %1264 = vsyncadd [#allocation2], 4294967264 }
  0x13   :  { %17 = sfence }
  0x14   :  { %18 = vsyncpa [#allocation6], 0 }
  0x15   :  { %20 = vsyncpa [#allocation6 + $0x1], 0 }
  0x16   :  { %21 = vsyncpa [#allocation9], 0 }
  0x17   :  { %23 = vsyncpa [#allocation9 + $0x1], 0 }
  0x18   :  { %24 = vsyncpa [#allocation7], 0 }
  0x19   :  { %26 = vsyncpa [#allocation7 + $0x1], 0 }
  0x1a   :  { %27 = vsyncpa [#allocation13], 0 }
  0x1b   :  { %29 = vsyncpa [#allocation13 + $0x1], 0  ;;  %s1376_s0 = smov 0   ;;  %s1378_s17 = smov 0  }
  0x1c   :  { %s1380_s18 = smov 0   ;;  %s1382_s19 = smov 0  }
  0x1d   :  { %s1384_s1 = smov 0   ;;  %s1386_s20 = smov 0  }
  0x1e LB: > { %1843 = sst [smem:[#allocation19_spill]] %s1291_s18  ;;  %s1407_s21 = sadd.s32 4294967295, %s1303_s20   ;;  %s1303_s20 = sphi %s1386_s20, %s35_s20   ;;  %s1299_s1 = sphi %s1384_s1, %s1878_s1   ;;  %s1295_s19 = sphi %s1382_s19, %s1877_s19   ;;  %s1291_s18 = sphi %s1380_s18, %s1876_s18   ;;  %s1287_s17 = sphi %s1378_s17, %s1880_s17   ;;  %s1283_s0 = sphi %s1376_s0, %s1879_s0  }
  0x1f   : > { %1844 = sst [smem:[#allocation20_spill]] %s1299_s1  ;;  %s925_s22 = sadd.s32 4294967294, %s1303_s20  }
  0x20   : > { %s47_s23 = sadd.s32 1, %s1299_s1  ;;  %s56_s24 = sadd.s32 1, %s1291_s18 }
  0x21   : > { %p49_p6 = scmp.ge.s32.totalorder %s47_s23, 2  ;;  %p63_p7 = scmp.ne.s32.totalorder %s1291_s18, %s1287_s17 }
  0x22   : > { %p64_p8 = scmp.eq.s32.totalorder %s1303_s20, 0  ;;  %p69_p9 = scmp.ne.s32.totalorder %s1287_s17, %s1283_s0 }
  0x23   : > { %s1882_s23 = smov (%p49_p6, %s47_s23), 0  ;;  %p70_p11 = scmp.eq.s32.totalorder %s1407_s21, 0 }
  0x24   : > { %1845 = sst [smem:[#allocation21_spill]] %s1882_s23  ;;  %p1419_p10 = por %p64_p8, %p63_p7 }
  0x25   : > { %s51_s26 = ssub.s32 %s1299_s1, %s1882_s23  ;;  %p147_p12 = scmp.eq.s32.totalorder %s1407_s21, 1 }
  0x26   : > { %p54_p13 = scmp.eq.s32.totalorder %s51_s26, 0  ;;  %p1427_p0 = por %p70_p11, %p69_p9 }
  0x27   : > { %p1431_p1 = por %p147_p12, %p63_p7  ;;  %p153_p2 = scmp.eq.s32.totalorder %s925_s22, 1 }
  0x28   : > { %s1847_s27 = scalar_select %p1427_p0, 1, 0 }
  0x29   : > { %s1848_s28 = scalar_select %p1431_p1, 1, 0 }
  0x2a   : > { %s1436_s29 = scalar_select %p54_p13, %s1291_s18, %s56_s24  }
  0x2b   : > { %p1438_p3 = por %p153_p2, %p69_p9  ;;  %p1000_p5 = scmp.lt.s32.totalorder %s1303_s20, 2 }
  0x2c   : > { %1849 = sst [smem:[#allocation22_spill]] %s1436_s29  ;;  %s1445_s7 = sand.u32 1, %s1291_s18  }
  0x2d   : > { %s1850_s30 = scalar_select %p1438_p3, 1, 0 }
  0x2e   : > { %s224_s8 = sand.u32 1, %s1303_s20   ;;  %s1835_s9 = sshll.u32 %s1445_s7, 3 }
  0x2f   : > { %p1451_p6 = pnand %p1000_p5, %p1419_p10  ;;  %s932_s11 = sshll.u32 %s1299_s1, 7 }
  0x30   : > { %s1852_s3 = sld [smem:[#allocation24_spill]]  ;;  %s228_s15 = scalar_lea.vmem [#allocation8], %s1835_s9 }
  0x31   : > { %s1851_s10 = scalar_select %p1451_p6, 1, 0 }
  0x32   : > { %s235_s16 = sshll.u32 %s228_s15, 4  ;;  %s1468_s25 = scalar_lea.hbm %s1830_s4, %s932_s11  ;;  %s1463_s16 = int_to_ptr.vmem [resolvable:$true] %s235_s16 }
  0x33   : > { %s1470_s26 = scalar_lea.sflag [#allocation9], %s224_s8  ;;  %p1476_p8 = pneg %p1451_p6 }
  0x36   : > { %s1459_s14 = scalar_lea.hbm %s1852_s3, %s932_s11  ;;  %s1098_s9 = scalar_lea.hbm %s1852_s3, 256 }
  0x37   : > { %s1093_s23 = scalar_lea.hbm %s1459_s14, 128  ;;  %p1099_p11 = scmp.lt.u32.totalorder %s1459_s14, %s1852_s3 }
  0x38   : > { %p1094_p7 = scmp.ne.s32.totalorder %s1459_s14, %s1093_s23  ;;  %p1100_p12 = scmp.lt.u32.totalorder %s1098_s9, %s1093_s23 }
  0x39   : > { %p1102_p2 = scmp.lt.u32.totalorder %s1093_s23, %s1459_s14 }
  0x3a   : > { %p1096_p9 = pnand %p1476_p8, %p1094_p7  ;;  %p1101_p13 = por %p1100_p12, %p1099_p11 }
  0x3c   : > { %p1097_p10 = pneg %p1096_p9  ;;  %p1103_p5 = por %p1102_p2, %p1101_p13 }
  0x3e   : > { %p1104_p4 = pnand %p1103_p5, %p1097_p10 }
  0x40   : > { %1107 = shalt.err (!%p1104_p4)
}
  0x41   : > { %s1108_s8 = scalar_lea.vmem %s1463_s16, 128  ;;  %s1307_s24 = smov [#allocation8]  }
  0x42   : > { %p1109_p7 = scmp.ne.s32.totalorder %s1463_s16, %s1108_s8  ;;  %s1113_s13 = sshll.u32 %s1307_s24, 4  ;;  %s1114_s13 = int_to_ptr.vmem [resolvable:$false] %s1113_s13 }
  0x43   : > { %s1115_s15 = scalar_lea.vmem %s1114_s13, 256  ;;  %p1116_p1 = scmp.lt.s32.totalorder %s1463_s16, %s1114_s13 }
  0x44   : > { %p1111_p9 = pnand %p1109_p7, %p1476_p8  ;;  %p1117_p0 = scmp.lt.s32.totalorder %s1115_s15, %s1108_s8 }
  0x46   : > { %p1112_p3 = pneg %p1111_p9  ;;  %p1118_p11 = por %p1117_p0, %p1116_p1 }
  0x48   : > { %p1119_p12 = pnand %p1118_p11, %p1112_p3 }
  0x4a   : > { %1122 = shalt.err (!%p1119_p12)
}
  0x4b   : > { %989 = dma.hbm_to_vmem [thread:$0]  (!%p1451_p6), %s1459_s14, 128, %s1463_s16, %s1470_s26  }
  0x4c   : > { %p935_p4 = scmp.ge.s32.totalorder %s1303_s20, 1  ;;  %p258_p10 = scmp.lt.s32.totalorder %s1303_s20, 3 }
  0x4d   : > { %s928_s9 = sshll.u32 %s1445_s7, 4  ;;  %s954_s22 = sshll.u32 %s1299_s1, 8 }
  0x4e   : > { %p1502_p13 = pnand %p935_p4, %p258_p10  ;;  %s1855_s2 = sld [smem:[#allocation23_spill]] }
  0x4f   : > { %s205_s13 = scalar_lea.vmem [#allocation5], %s928_s9  ;;  %s202_s14 = scalar_lea.sflag [#allocation6], %s1445_s7 }
  0x50   : > { %s1854_s23 = scalar_select %p1502_p13, 1, 0 }
  0x51   : > { %s214_s15 = sshll.u32 %s205_s13, 4  ;;  %s1513_s15 = int_to_ptr.vmem [resolvable:$true] %s214_s15 }
  0x54   : > { %s1511_s24 = scalar_lea.hbm %s1855_s2, %s954_s22  ;;  %s1128_s11 = scalar_lea.hbm %s1855_s2, 512 }
  0x55   : > { %s1123_s16 = scalar_lea.hbm %s1511_s24, 256  ;;  %p1129_p2 = scmp.lt.u32.totalorder %s1511_s24, %s1855_s2 }
  0x56   : > { %p1124_p0 = scmp.ne.s32.totalorder %s1511_s24, %s1123_s16  ;;  %p1130_p5 = scmp.lt.u32.totalorder %s1128_s11, %s1123_s16 }
  0x57   : > { %p1132_p9 = scmp.lt.u32.totalorder %s1123_s16, %s1511_s24 }
  0x58   : > { %p1126_p1 = pnand %p1124_p0, %p1476_p8  ;;  %p1131_p7 = por %p1130_p5, %p1129_p2 }
  0x5a   : > { %p1127_p3 = pneg %p1126_p1  ;;  %p1133_p11 = por %p1132_p9, %p1131_p7 }
  0x5c   : > { %p1134_p12 = pnand %p1133_p11, %p1127_p3 }
  0x5e   : > { %1137 = shalt.err (!%p1134_p12)
}
  0x5f   : > { %s1138_s9 = scalar_lea.vmem %s1513_s15, 256  ;;  %s1308_s3 = smov [#allocation5]  }
  0x60   : > { %p1139_p4 = scmp.ne.s32.totalorder %s1513_s15, %s1138_s9  ;;  %s1143_s1 = sshll.u32 %s1308_s3, 4  ;;  %s1144_s1 = int_to_ptr.vmem [resolvable:$false] %s1143_s1 }
  0x61   : > { %s1145_s13 = scalar_lea.vmem %s1144_s1, 512  ;;  %p1146_p1 = scmp.lt.s32.totalorder %s1513_s15, %s1144_s1 }
  0x62   : > { %p1141_p10 = pnand %p1139_p4, %p1476_p8  ;;  %p1147_p13 = scmp.lt.s32.totalorder %s1145_s13, %s1138_s9 }
  0x64   : > { %p1142_p0 = pneg %p1141_p10  ;;  %p1148_p2 = por %p1147_p13, %p1146_p1 }
  0x66   : > { %p1149_p5 = pnand %p1148_p2, %p1142_p0 }
  0x68   : > { %1152 = shalt.err (!%p1149_p5)
}
  0x69   : > { %s1309_s16 = smov 128   ;;  %s1310_s11 = smov 8  }
  0x6a   : > { %986 = dma.hbm_to_vmem [thread:$0]  (!%p1451_p6), %s1511_s24, 256, %s1513_s15, %s202_s14, %s1309_s16, %s1309_s16, %s1310_s11  }
  0x6b   : > { %s1856_s22 = sshll.u32 %s1445_s7, 3  ;;  %s1153_s3 = scalar_lea.hbm %s1468_s25, 128 }
  0x6c   : > { %s246_s8 = scalar_lea.vmem [#allocation10], %s1856_s22  ;;  %p1154_p13 = scmp.ne.s32.totalorder %s1468_s25, %s1153_s3 }
  0x6d   : > { %s253_s9 = sshll.u32 %s246_s8, 4  ;;  %s1158_s2 = scalar_lea.hbm %s1830_s4, 256  ;;  %s254_s9 = int_to_ptr.vmem [resolvable:$true] %s253_s9 }
  0x6e   : > { %p1156_p3 = pnand %p1154_p13, %p1476_p8  ;;  %p1159_p9 = scmp.lt.u32.totalorder %s1468_s25, %s1830_s4 }
  0x6f   : > { %p1160_p11 = scmp.lt.u32.totalorder %s1158_s2, %s1153_s3  ;;  %p1162_p4 = scmp.lt.u32.totalorder %s1153_s3, %s1468_s25 }
  0x70   : > { %p1157_p7 = pneg %p1156_p3 }
  0x71   : > { %p1161_p12 = por %p1160_p11, %p1159_p9 }
  0x73   : > { %p1163_p10 = por %p1162_p4, %p1161_p12 }
  0x75   : > { %p1164_p0 = pnand %p1163_p10, %p1157_p7 }
  0x77   : > { %1167 = shalt.err (!%p1164_p0)
}
  0x78   : > { %s1168_s7 = scalar_lea.vmem %s254_s9, 128  ;;  %s1311_s24 = smov [#allocation10]  }
  0x79   : > { %p1169_p1 = scmp.ne.s32.totalorder %s254_s9, %s1168_s7  ;;  %s1173_s15 = sshll.u32 %s1311_s24, 4  ;;  %s1174_s15 = int_to_ptr.vmem [resolvable:$false] %s1173_s15 }
  0x7a   : > { %s1175_s14 = scalar_lea.vmem %s1174_s15, 256  ;;  %p1176_p13 = scmp.lt.s32.totalorder %s254_s9, %s1174_s15 }
  0x7b   : > { %p1171_p2 = pnand %p1169_p1, %p1476_p8  ;;  %p1177_p3 = scmp.lt.s32.totalorder %s1175_s14, %s1168_s7 }
  0x7d   : > { %p1172_p5 = pneg %p1171_p2  ;;  %p1178_p6 = por %p1177_p3, %p1176_p13 }
  0x7f   : > { %p1179_p9 = pnand %p1178_p6, %p1172_p5 }
  0x81   : > { %1182 = shalt.err (!%p1179_p9)
}
  0x82   : > { %p1857_p11 = scmp.ne.s32.totalorder %s1851_s10, 0  ;;  %p1858_p7 = scmp.ne.s32.totalorder %s1854_s23, 0 }
  0x83   : > { %s1562_s2 = sand.u32 (!%p1858_p7), 1, %s1287_s17   ;;  %p1859_p6 = scmp.ne.s32.totalorder (!%p1858_p7), %s1847_s27, 0 }
  0x84   : > { %992 = dma.hbm_to_vmem [thread:$0]  (!%p1857_p11), %s1468_s25, 128, %s254_s9, %s1470_s26  }
  0x85   : > { %262 = sbr.rel (%p1858_p7) target bundleno = 1514 (0x5ea), region = 32  ;;  %s1565_s18 = sshll.u32 (!%p1858_p7), %s1562_s2, 4 }
  0x86   : > { %s265_s29 = scalar_lea.sflag (!%p1858_p7), [#allocation6], %s1562_s2  ;;  %s268_s12 = scalar_lea.vmem (!%p1858_p7), [#allocation5], %s1565_s18 }
  0x8c   : > { %1266 = dma.done.wait (%p1859_p6), %s265_s29, 256  }
  0x8d   : > { %1268 = vsyncadd (%p1859_p6), %s265_s29, 4294967040  ;;  %s273_s10 = sand.u32 1, %s1407_s21   ;;  %s937_s25 = sshll.u32 %s1562_s2, 3 }
  0x8e   : > { %s274_s26 = scalar_lea.sflag [#allocation9], %s273_s10  ;;  %s277_s23 = scalar_lea.vmem [#allocation8], %s937_s25 }
  0x8f   : > { %1270 = dma.done.wait (%p1859_p6), %s274_s26, 256  }
  0x90   : > { %1272 = vsyncadd (%p1859_p6), %s274_s26, 4294967040  ;;  %vm332_vm0 = vcmask 64512   ;;  %v331_v0 = vld [vmem:[%s277_s23] sm:$0xff]  ;;  %v330_v2 = vld [vmem:[%s268_s12 + $0x8] sm:$0xff]  ;;  %s418_s21 = sld [smem:[#allocation4 + %s1295_s19]]  ;;  %v416_v3 = vlaneseq  ;;  %vm608_vm11 = vcmask 7168  }
  0x91   : > { %v329_v1 = vld [vmem:[%s268_s12] sm:$0xff]  ;;  %963 = vmatprep.subr.mxu0 %v331_v0  ;;  %s286_s27 = scalar_lea.vmem [#allocation10], %s937_s25  ;;  %s1679_s16 = sld [smem:[#allocation3 + %s1295_s19]] }
  0x92   : > { %965 = vmatprep.mubr.msk.f32.mxu0 %vm332_vm0, %v329_v1  ;;  %964 = vmatpush3.msra.mxu0 %v331_v0  ;;  %v1585_v5 = vand.u32 127, %v416_v3  ;;  %s1693_s11 = scalar_lea.vmem [#allocation12], %s1565_s18  ;;  %s955_s8 = sshll.u32 %s1295_s19, 8 }
  0x93   : > { %966 = vmatmul.mubr.msk.f32.vlgmr.msra.gmra.mrb[0].mxu0 %vm332_vm0, %v330_v2  ;;  %s759_s22 = sshll.u32 %s1693_s11, 4  ;;  %s1736_s1 = scalar_lea.hbm %s1832_s6, %s955_s8  ;;  %s1738_s22 = int_to_ptr.vmem [resolvable:$true] %s759_s22 }
  0x94   : > { %s726_s13 = scalar_lea.sflag [#allocation13], %s1562_s2  ;;  %s1183_s7 = scalar_lea.vmem %s1738_s22, 256 }
  0x95   : > { %p1184_p8 = scmp.ne.s32.totalorder %s1738_s22, %s1183_s7  ;;  %p1872_p12 = scmp.ne.s32.totalorder %s1848_s28, 0 }
  0x96   : > { %v419_v8 = vstv %s418_s21  ;;  %s1313_s24 = smov [#allocation12]  }
  0x97   : > { %vm420_vm1 = vcmp.lt.s32.totalorder %v1585_v5, %v419_v8  ;;  %p1185_p4 = pnand %p1184_p8, %p1872_p12  ;;  %s1187_s15 = sshll.u32 %s1313_s24, 4  ;;  %s1188_s15 = int_to_ptr.vmem [resolvable:$false] %s1187_s15 }
  0x98   : > { %s1189_s14 = scalar_lea.vmem %s1188_s15, 512  ;;  %p1190_p0 = scmp.lt.s32.totalorder %s1738_s22, %s1188_s15 }
  0x99   : > { %p1186_p10 = pneg %p1185_p4  ;;  %p1191_p1 = scmp.lt.s32.totalorder %s1189_s14, %s1183_s7 }
  0x9b   : > { %p1192_p2 = por %p1191_p1, %p1190_p0 }
  0x9d   : > { %p1193_p5 = pnand %p1192_p2, %p1186_p10 }
 0x166   : > { %v967_v4 = vpop.f32.mrb[0].mxu0 }
 0x167   : > { %v415_v6 = vmax.f32 %v967_v4, 0.0  ;;  %v405_v7 = vpop.f32.mrb[1].mxu0 }
 0x168   : > { %v414_v9 = vmax.f32 %v405_v7, 0.0 }
 0x169   : > { %v435_v10 = vand.u32 4294963200, %v415_v6 }
 0x16a   : > { %v434_v11 = vand.u32 4294963200, %v414_v9 }
 0x16b   : > { %v437_v12 = vor.u32 %v435_v10, %v1585_v5 }
 0x16c   : > { %v436_v13 = vor.u32 %v434_v11, %v1585_v5 }
 0x16d   : > { %v441_v14 = vsel %vm420_vm1, %v437_v12, 2147483647 }
 0x16e   : > { %v440_v15 = vsel %vm420_vm1, %v436_v13, 2147483647  ;;  %v457_v17 = vsel %vm332_vm0, %v441_v14, 2147483647 }
 0x16f   : > { %v442_v16 = vsel %vm332_vm0, %v440_v15, 2147483647  ;;  %v459_v20 = vshra.s32 %v457_v17, 16  ;;  %v458_v25 = vand.u32 65535, %v457_v17 }
 0x170   : > { %v444_v18 = vshra.s32 %v442_v16, 16  ;;  %v443_v22 = vand.u32 65535, %v442_v16 }
 0x171   : > { %v461_v21 = vcvt.s32.f32 %v459_v20  ;;  %v460_v28 = vcvt.s32.f32 %v458_v25 }
 0x172   : > { %v446_v19 = vcvt.s32.f32 %v444_v18  ;;  %v445_v24 = vcvt.s32.f32 %v443_v22 }
 0x174   : > { %447 = vmin.xlane.f32.xlu0 %v446_v19 }
 0x178   : > { %462 = vmin.xlane.f32.xlu0 %v461_v21 }
 0x201   : > { %v448_v23 = vpop.xlane.xlu0 %447 }
 0x202   : > { %vm449_vm2 = vcmp.eq.f32.partialorder %v446_v19, %v448_v23  ;;  %v454_v30 = vcvt.f32.s32 %v448_v23 }
 0x203   : > { %v450_v26 = vsel %vm449_vm2, %v445_v24, inf }
 0x204   : > { %451 = vmin.xlane.f32.xlu1 %v450_v26  ;;  %v455_v32 = vshll.u32 %v454_v30, 16 }
 0x205   : > { %v463_v27 = vpop.xlane.xlu0 %462 }
 0x206   : > { %vm464_vm3 = vcmp.eq.f32.partialorder %v461_v21, %v463_v27  ;;  %v469_v33 = vcvt.f32.s32 %v463_v27 }
 0x207   : > { %v465_v29 = vsel %vm464_vm3, %v460_v28, inf  ;;  %vm611_vm3 = vcmask 15360  }
 0x208   : > { %466 = vmin.xlane.f32.xlu1 %v465_v29  ;;  %v470_v37 = vshll.u32 %v469_v33, 16 }
 0x291   : > { %v452_v31 = vpop.xlane.xlu1 %451 }
 0x292   : > { %v453_v34 = vcvt.f32.s32 %v452_v31 }
 0x294   : > { %v1592_v35 = vadd.s32 %v455_v32, %v453_v34 }
 0x295   : > { %v467_v36 = vpop.xlane.xlu1 %466 }
 0x296   : > { %vm474_vm4 = vcmp.lt.s32.totalorder %v1592_v35, 2139095040  ;;  %v468_v38 = vcvt.f32.s32 %v467_v36  ;;  %v472_v39 = vand.u32 4095, %v1592_v35  ;;  %v476_v62 = vand.u32 4294963200, %v1592_v35 }
 0x298   : > { %v1596_v40 = vadd.s32 %v470_v37, %v468_v38  ;;  %vm1599_vm5 = vcmp.eq.s32.totalorder %v1585_v5, %v472_v39  ;;  %v494_v42 = vsel %vm474_vm4, %v472_v39, 0  ;;  %v480_v0 = vadd.f32 1.1920929e-07, %v476_v62 }
 0x299   : > { %v496_v43 = vsel %vm1599_vm5, 2147483647, %v440_v15  ;;  %v423_v62 = vshrl.u32 %v416_v3, 7 }
 0x29a   : > { %vm475_vm6 = vcmp.lt.s32.totalorder %v1596_v40, 2139095040  ;;  %v498_v44 = vsel %vm332_vm0, %v496_v43, 2147483647  ;;  %v473_v46 = vand.u32 4095, %v1596_v40  ;;  %v477_v1 = vand.u32 4294963200, %v1596_v40 }
 0x29b   : > { %v500_v45 = vshra.s32 %v498_v44, 16  ;;  %v499_v54 = vand.u32 65535, %v498_v44  ;;  %1057 = vrcp.f32 %v480_v0  ;;  %v429_v0 = vstv %s1679_s16 }
 0x29c   : > { %vm1611_vm7 = vcmp.eq.s32.totalorder %v1585_v5, %v473_v46  ;;  %v495_v49 = vsel %vm475_vm6, %v473_v46, 0  ;;  %v481_v9 = vadd.f32 1.1920929e-07, %v477_v1 }
 0x29d   : > { %v502_v47 = vcvt.s32.f32 %v500_v45  ;;  %v497_v50 = vsel %vm1611_vm7, 2147483647, %v441_v14  ;;  %v501_v56 = vcvt.s32.f32 %v499_v54 }
 0x29e   : > { %v513_v51 = vsel %vm332_vm0, %v497_v50, 2147483647  ;;  %1059 = vrcp.f32 %v481_v9 }
 0x29f   : > { %503 = vmin.xlane.f32.xlu0 %v502_v47  ;;  %v515_v52 = vshra.s32 %v513_v51, 16  ;;  %v514_v57 = vand.u32 65535, %v513_v51 }
 0x2a1   : > { %v517_v53 = vcvt.s32.f32 %v515_v52  ;;  %v516_v60 = vcvt.s32.f32 %v514_v57 }
 0x2a3   : > { %518 = vmin.xlane.f32.xlu1 %v517_v53 }
 0x2a5   : > { %v1058_v31 = vpop.eup %1057 }
 0x2a6   : > { %v1648_v37 = vsel %vm474_vm4, %v1058_v31, 0.0  ;;  %vm1683_vm4 = vcmp.lt.s32.totalorder %v423_v62, %v429_v0 }
 0x2a8   : > { %v1060_v36 = vpop.eup %1059 }
 0x2a9   : > { %v1663_v35 = vsel %vm475_vm6, %v1060_v36, 0.0 }
 0x2aa   : > { %v489_v41 = vsel %vm1611_vm7, %v1663_v35, 0.0 }
 0x32c   : > { %v504_v55 = vpop.xlane.xlu0 %503 }
 0x32d   : > { %vm505_vm8 = vcmp.eq.f32.partialorder %v502_v47, %v504_v55  ;;  %v510_v63 = vcvt.f32.s32 %v504_v55 }
 0x32e   : > { %v506_v58 = vsel %vm505_vm8, %v501_v56, inf  ;;  %v629_v56 = vld [vmem:[%s286_s27] sm:$0xff]  ;;  %vm620_vm8 = vcmp.eq.s32.totalorder %v1585_v5, 0 }
 0x32f   : > { %507 = vmin.xlane.f32.xlu0 %v506_v58  ;;  %v511_v4 = vshll.u32 %v510_v63, 16  ;;  %968 = vmatprep.subr.mxu1 %v629_v56 }
 0x330   : > { %v519_v59 = vpop.xlane.xlu1 %518  ;;  %969 = vmatpush3.msra.mxu1 %v629_v56 }
 0x331   : > { %vm520_vm9 = vcmp.eq.f32.partialorder %v517_v53, %v519_v59  ;;  %v525_v7 = vcvt.f32.s32 %v519_v59 }
 0x332   : > { %v521_v61 = vsel %vm520_vm9, %v516_v60, inf }
 0x333   : > { %522 = vmin.xlane.f32.xlu1 %v521_v61  ;;  %v526_v13 = vshll.u32 %v525_v7, 16 }
 0x3bc   : > { %v508_v2 = vpop.xlane.xlu0 %507 }
 0x3bd   : > { %v509_v6 = vcvt.f32.s32 %v508_v2 }
 0x3bf   : > { %v512_v8 = vadd.s32 %v511_v4, %v509_v6 }
 0x3c0   : > { %v523_v11 = vpop.xlane.xlu1 %522 }
 0x3c1   : > { %vm530_vm10 = vcmp.lt.s32.totalorder %v512_v8, 2139095040  ;;  %v532_v10 = vand.u32 4294963200, %v512_v8  ;;  %v528_v12 = vand.u32 4095, %v512_v8  ;;  %v524_v14 = vcvt.f32.s32 %v523_v11 }
 0x3c2   : > { %v424_v11 = vadd.s32 8, %v423_v62 }
 0x3c3   : > { %v536_v15 = vadd.f32 1.1920929e-07, %v532_v10  ;;  %vm1623_vm12 = vcmp.eq.s32.totalorder %v1585_v5, %v528_v12  ;;  %v550_v17 = vsel %vm530_vm10, %v528_v12, 0  ;;  %v527_v18 = vadd.s32 %v526_v13, %v524_v14 }
 0x3c4   : > { %v552_v19 = vsel %vm1623_vm12, 2147483647, %v496_v43  ;;  %v1631_v20 = vsel %vm608_vm11, %v494_v42, %v550_v17  ;;  %v488_v42 = vsel %vm1599_vm5, %v1648_v37, 0.0  ;;  %vm717_vm5 = vcmask 23552  }
 0x3c5   : > { %1061 = vrcp.f32 %v536_v15  ;;  %v554_v21 = vsel %vm332_vm0, %v552_v19, 2147483647  ;;  %vm531_vm13 = vcmp.lt.s32.totalorder %v527_v18, 2139095040  ;;  %v533_v22 = vand.u32 4294963200, %v527_v18 }
 0x3c6   : > { %v556_v23 = vshra.s32 %v554_v21, 16  ;;  %v529_v24 = vand.u32 4095, %v527_v18  ;;  %vm1697_vm7 = vcmp.lt.s32.totalorder %v424_v11, %v429_v0 }
 0x3c7   : > { %v537_v25 = vadd.f32 1.1920929e-07, %v533_v22 }
 0x3c8   : > { %v558_v26 = vcvt.s32.f32 %v556_v23  ;;  %vm1635_vm14 = vcmp.eq.s32.totalorder %v1585_v5, %v529_v24  ;;  %v551_v28 = vsel %vm531_vm13, %v529_v24, 0 }
 0x3c9   : > { %v553_v29 = vsel %vm1635_vm14, 2147483647, %v497_v50  ;;  %v1643_v30 = vsel %vm608_vm11, %v495_v49, %v551_v28  ;;  %1063 = vrcp.f32 %v537_v25  ;;  %v555_v50 = vand.u32 65535, %v554_v21 }
 0x3ca   : > { %559 = vmin.xlane.f32.xlu0 %v558_v26  ;;  %v569_v32 = vsel %vm332_vm0, %v553_v29, 2147483647 }
 0x3cb   : > { %v571_v33 = vshra.s32 %v569_v32, 16  ;;  %v557_v51 = vcvt.s32.f32 %v555_v50  ;;  %v570_v52 = vand.u32 65535, %v569_v32 }
 0x3cd   : > { %v573_v34 = vcvt.s32.f32 %v571_v33  ;;  %v572_v55 = vcvt.s32.f32 %v570_v52 }
 0x3cf   : > { %v1062_v38 = vpop.eup %1061  ;;  %574 = vmin.xlane.f32.xlu1 %v573_v34 }
 0x3d0   : > { %v1651_v39 = vsel %vm530_vm10, %v1062_v38, 0.0 }
 0x3d1   : > { %v544_v43 = vsel %vm1623_vm12, %v1651_v39, 0.0  ;;  %v548_v22 = vadd.f32 %v1651_v39, %v1648_v37 }
 0x3d2   : > { %v1659_v44 = vadd.f32 %v544_v43, %v488_v42 }
 0x3d3   : > { %v1064_v45 = vpop.eup %1063 }
 0x3d4   : > { %v1666_v46 = vsel %vm531_vm13, %v1064_v45, 0.0 }
 0x3d5   : > { %v545_v47 = vsel %vm1635_vm14, %v1666_v46, 0.0  ;;  %v549_v31 = vadd.f32 %v1666_v46, %v1663_v35 }
 0x3d6   : > { %v1674_v49 = vadd.f32 %v545_v47, %v489_v41 }
 0x457   : > { %v560_v40 = vpop.xlane.xlu0 %559 }
 0x458   : > { %vm561_vm15 = vcmp.eq.f32.partialorder %v558_v26, %v560_v40  ;;  %v566_v57 = vcvt.f32.s32 %v560_v40  ;;  %v1312_v26 = vmov 0.0  }
 0x459   : > { %v562_v53 = vsel %vm561_vm15, %v557_v51, inf  ;;  %v943_v27 = vsel %vm620_vm8, 1.0, %v1312_v26 }
 0x45a   : > { %563 = vmin.xlane.f32.xlu0 %v562_v53  ;;  %v567_v59 = vshll.u32 %v566_v57, 16 }
 0x45c   : > { %v575_v54 = vpop.xlane.xlu1 %574 }
 0x45d   : > { %vm576_vm1 = vcmp.eq.f32.partialorder %v573_v34, %v575_v54  ;;  %v581_v61 = vcvt.f32.s32 %v575_v54 }
 0x45e   : > { %v577_v48 = vsel %vm576_vm1, %v572_v55, inf }
 0x45f   : > { %578 = vmin.xlane.f32.xlu1 %v577_v48  ;;  %v582_v6 = vshll.u32 %v581_v61, 16 }
 0x4e7   : > { %v564_v58 = vpop.xlane.xlu0 %563 }
 0x4e8   : > { %v565_v60 = vcvt.f32.s32 %v564_v58 }
 0x4ea   : > { %v568_v63 = vadd.s32 %v567_v59, %v565_v60 }
 0x4ec   : > { %v584_v1 = vand.u32 4095, %v568_v63  ;;  %vm586_vm2 = vcmp.lt.s32.totalorder %v568_v63, 2139095040  ;;  %v588_v2 = vand.u32 4294963200, %v568_v63  ;;  %v579_v4 = vpop.xlane.xlu1 %578 }
 0x4ed   : > { %v580_v7 = vcvt.f32.s32 %v579_v4 }
 0x4ee   : > { %v592_v9 = vadd.f32 1.1920929e-07, %v588_v2  ;;  %v606_v10 = vsel %vm586_vm2, %v584_v1, 0  ;;  %vm598_vm9 = vcmp.eq.s32.totalorder %v1585_v5, %v584_v1 }
 0x4ef   : > { %v583_v3 = vadd.s32 %v582_v6, %v580_v7  ;;  %v612_v12 = vsel %vm611_vm3, %v1631_v20, %v606_v10 }
 0x4f0   : > { %1065 = vrcp.f32 %v592_v9  ;;  %v618_v13 = vsel %vm1683_vm4, %v612_v12, 0 }
 0x4f1   : > { %v585_v14 = vand.u32 4095, %v583_v3  ;;  %vm587_vm6 = vcmp.lt.s32.totalorder %v583_v3, 2139095040  ;;  %v589_v15 = vand.u32 4294963200, %v583_v3  ;;  %718 = vst.msk [vmem:[%s1693_s11] sm:$0xff] %vm717_vm5, %v618_v13 }
 0x4f3   : > { %v593_v17 = vadd.f32 1.1920929e-07, %v589_v15  ;;  %v607_v18 = vsel %vm587_vm6, %v585_v14, 0  ;;  %vm599_vm10 = vcmp.eq.s32.totalorder %v1585_v5, %v585_v14 }
 0x4f4   : > { %v613_v19 = vsel %vm611_vm3, %v1643_v30, %v607_v18 }
 0x4f5   : > { %1067 = vrcp.f32 %v593_v17  ;;  %v619_v20 = vsel %vm1697_vm7, %v613_v19, 0 }
 0x4f6   : > { %719 = vst.msk [vmem:[%s1693_s11 + $0x8] sm:$0xff] %vm717_vm5, %v619_v20 }
 0x4fa   : > { %v1066_v21 = vpop.eup %1065 }
 0x4fb   : > { %v596_v23 = vsel %vm586_vm2, %v1066_v21, 0.0 }
 0x4fc   : > { %v600_v24 = vsel %vm598_vm9, %v596_v23, 0.0  ;;  %v604_v25 = vadd.f32 %v596_v23, %v548_v22 }
 0x4fd   : > { %v602_v28 = vadd.f32 %v600_v24, %v1659_v44 }
 0x4fe   : > { %v625_v29 = vmax.f32 %v604_v25, 1e-30 }
 0x4ff   : > { %v1068_v30 = vpop.eup %1067  ;;  %v623_v32 = vsel %vm1683_vm4, %v602_v28, %v943_v27 }
 0x500   : > { %v597_v33 = vsel %vm587_vm6, %v1068_v30, 0.0  ;;  %v627_v34 = vsel %vm1683_vm4, %v625_v29, 1.0  ;;  %970 = vmatprep.mubr.msk.f32.mxu1 %vm332_vm0, %v623_v32 }
 0x501   : > { %v601_v36 = vsel %vm599_vm10, %v597_v33, 0.0  ;;  %v605_v37 = vadd.f32 %v597_v33, %v549_v31 }
 0x502   : > { %v603_v38 = vadd.f32 %v601_v36, %v1674_v49 }
 0x503   : > { %v626_v39 = vmax.f32 %v605_v37, 1e-30 }
 0x504   : > { %v624_v42 = vsel %vm1697_vm7, %v603_v38, %v943_v27 }
 0x505   : > { %v628_v43 = vsel %vm1697_vm7, %v626_v39, 1.0  ;;  %971 = vmatmul.mubr.msk.f32.vlgmr.msra.gmra.mrb[0].mxu1 %vm332_vm0, %v624_v42 }
 0x506   : > { %1196 = shalt.err (!%p1193_p5)
}
 0x507   : > { %s1197_s29 = scalar_lea.hbm %s1736_s1, 256  ;;  %s1201_s25 = scalar_lea.hbm %s1832_s6, 512 }
 0x508   : > { %p1198_p13 = scmp.ne.s32.totalorder %s1736_s1, %s1197_s29  ;;  %p1202_p11 = scmp.lt.u32.totalorder %s1736_s1, %s1832_s6 }
 0x509   : > { %p1203_p7 = scmp.lt.u32.totalorder %s1201_s25, %s1197_s29  ;;  %p1205_p8 = scmp.lt.u32.totalorder %s1197_s29, %s1736_s1 }
 0x50a   : > { %p1199_p3 = pnand %p1198_p13, %p1872_p12 }
 0x50b   : > { %p1204_p6 = por %p1203_p7, %p1202_p11 }
 0x50c   : > { %p1200_p9 = pneg %p1199_p3 }
 0x50d   : > { %p1206_p4 = por %p1205_p8, %p1204_p6 }
 0x50f   : > { %p1207_p10 = pnand %p1206_p4, %p1200_p9 }
 0x511   : > { %1210 = shalt.err (!%p1207_p10)
}
 0x512   : > { %s1314_s21 = smov 128   ;;  %s1315_s27 = smov 8   ;;  %1069 = vrcp.f32 %v628_v43 }
 0x513   : > { %980 = dma.vmem_to_hbm [thread:$0]  (%p1872_p12), %s1738_s22, 256, %s1736_s1, %s726_s13, %s1314_s21, %s1314_s21, %s1315_s27   ;;  %1071 = vrcp.f32 %v627_v34 }
 0x514   : > { %s318_s16 = scalar_lea.vmem [#allocation11], %s1565_s18  ;;  %s1775_s22 = scalar_lea.hbm %s1831_s5, %s955_s8 }
 0x515   : > { %s741_s11 = sshll.u32 %s318_s16, 4  ;;  %s721_s18 = scalar_lea.sflag [#allocation7], %s1562_s2  ;;  %s1768_s11 = int_to_ptr.vmem [resolvable:$true] %s741_s11 }
 0x516   : > { %s1211_s1 = scalar_lea.vmem %s1768_s11, 256  ;;  %s1316_s13 = smov [#allocation11]  }
 0x517   : > { %p1212_p0 = scmp.ne.s32.totalorder %s1768_s11, %s1211_s1  ;;  %s1215_s7 = sshll.u32 %s1316_s13, 4  ;;  %s1216_s7 = int_to_ptr.vmem [resolvable:$false] %s1215_s7 }
 0x518   : > { %s1217_s24 = scalar_lea.vmem %s1216_s7, 512  ;;  %p1218_p5 = scmp.lt.s32.totalorder %s1768_s11, %s1216_s7 }
 0x519   : > { %p1213_p1 = pnand %p1212_p0, %p1872_p12  ;;  %p1219_p13 = scmp.lt.s32.totalorder %s1217_s24, %s1211_s1 }
 0x51b   : > { %p1214_p2 = pneg %p1213_p1  ;;  %p1220_p3 = por %p1219_p13, %p1218_p5 }
 0x51c   : > { %v1070_v5 = vpop.eup %1069 }
 0x51d   : > { %v1072_v35 = vpop.eup %1071  ;;  %p1221_p9 = pnand %p1220_p3, %p1214_p2 }
 0x5d8   : > { %v972_v44 = vpop.f32.mrb[0].mxu1 }
 0x5d9   : > { %v714_v45 = vmul.f32 %v1070_v5, %v972_v44  ;;  %v702_v46 = vpop.f32.mrb[1].mxu1 }
 0x5da   : > { %v713_v41 = vmul.f32 %v1072_v35, %v702_v46 }
 0x5db   : > { %716 = vst [vmem:[%s318_s16 + $0x8] sm:$0xff] %v714_v45 }
 0x5dc   : > { %715 = vst [vmem:[%s318_s16] sm:$0xff] %v713_v41 }
 0x5dd   : > { %1224 = shalt.err (!%p1221_p9)
}
 0x5de   : > { %s1225_s19 = scalar_lea.hbm %s1775_s22, 256  ;;  %s1229_s14 = scalar_lea.hbm %s1831_s5, 512 }
 0x5df   : > { %p1226_p11 = scmp.ne.s32.totalorder %s1775_s22, %s1225_s19  ;;  %p1230_p8 = scmp.lt.u32.totalorder %s1775_s22, %s1831_s5 }
 0x5e0   : > { %p1231_p4 = scmp.lt.u32.totalorder %s1229_s14, %s1225_s19  ;;  %p1233_p0 = scmp.lt.u32.totalorder %s1225_s19, %s1775_s22 }
 0x5e1   : > { %p1227_p7 = pnand %p1226_p11, %p1872_p12 }
 0x5e2   : > { %p1232_p10 = por %p1231_p4, %p1230_p8 }
 0x5e3   : > { %p1228_p6 = pneg %p1227_p7 }
 0x5e4   : > { %p1234_p1 = por %p1233_p0, %p1232_p10 }
 0x5e6   : > { %p1235_p2 = pnand %p1234_p1, %p1228_p6 }
 0x5e8   : > { %1238 = shalt.err (!%p1235_p2)
}
 0x5e9   : > { %979 = dma.vmem_to_hbm [thread:$0]  (%p1872_p12), %s1768_s11, 256, %s1775_s22, %s721_s18, %s1314_s21, %s1314_s21, %s1315_s27  }
 0x5ea PF: > { %s774_s10 = sand.u32 1, %s1283_s0   ;;  %p1873_p5 = scmp.ne.s32.totalorder %s1850_s30, 0 }
 0x5eb   : > { %p1874_p13 = scmp.ge.s32.totalorder %s1303_s20, 2  ;;  %s775_s25 = scalar_lea.sflag [#allocation7], %s774_s10 }
 0x5ed   : > { %p994_p3 = pnand %p1874_p13, %p1873_p5 }
 0x5ef   : > { %1274 = dma.done.wait (!%p994_p3), %s775_s25, 256  }
 0x5f0   : > { %1276 = vsyncadd (!%p994_p3), %s775_s25, 4294967040  ;;  %s784_s28 = scalar_lea.sflag [#allocation13], %s774_s10 }
 0x5f1   : > { %1278 = dma.done.wait (!%p994_p3), %s784_s28, 256  }
 0x5f2   : > { %1280 = vsyncadd (!%p994_p3), %s784_s28, 4294967040  ;;  %s35_s20 = sadd.s32 1, %s1303_s20   ;;  %s1875_s2 = sld [smem:[#allocation19_spill]] }
 0x5f3   : > { %p32_p9 = scmp.ge.s32.totalorder %s35_s20, 4   ;;  %s1876_s18 = sld [smem:[#allocation22_spill]] }
 0x5f4   : > { %s1877_s19 = sld [smem:[#allocation20_spill]]  ;;  %s1878_s1 = sld [smem:[#allocation21_spill]] }
 0x5f5   : > { %s1879_s0 = smov %s1287_s17  ;;  %34 = sbr.rel (!%p32_p9) target bundleno = 30 (0x1e), region = 118 }
 0x5f8   : > { %s1880_s17 = smov %s1875_s2 }
 0x5fc   :  { %789 = vsyncpa [#allocation6], 1 }
 0x5fd   :  { %791 = vsyncpa [#allocation6 + $0x1], 1 }
 0x5fe   :  { %792 = vsyncpa [#allocation9], 1 }
 0x5ff   :  { %794 = vsyncpa [#allocation9 + $0x1], 1 }
 0x600   :  { %795 = vsyncpa [#allocation7], 1 }
 0x601   :  { %797 = vsyncpa [#allocation7 + $0x1], 1 }
 0x602   :  { %798 = vsyncpa [#allocation13], 1 }
 0x603   :  { %800 = vsyncpa [#allocation13 + $0x1], 1 }

// kernel: pointnet_feature_upsampling.5
= control target key start
LH: loop header
LB: loop body
LE: loop exit
PB: predicated region body
PF: predicated region fallthrough
CT: control target
= control target key end

     0   :  { %s813_s21 = smov 0   ;;  %s815_s22 = smov 0   ;;  %s896_s0 = inlined_call_operand.vmem [shape: bf16[64,128], index: 0, kind: input, shape index: {}]   ;;  %s897_s1 = inlined_call_operand.vmem [shape: bf16[128,128], index: 1, kind: input, shape index: {}]   ;;  %s898_s2 = inlined_call_operand.vmem [shape: f32[64,1], index: 2, kind: input, shape index: {}]   ;;  %s899_s3 = inlined_call_operand.vmem [shape: f32[1,128], index: 3, kind: input, shape index: {}]   ;;  %s900_s4 = inlined_call_operand.vmem [shape: f32[1,128], index: 4, kind: input, shape index: {}]   ;;  %s901_s5 = inlined_call_operand.vmem [shape: bf16[64,128], index: 5, kind: output, shape index: {0}]   ;;  %s902_s6 = inlined_call_operand.vmem [shape: f32[2,2,128], index: 6, kind: output, shape index: {1}]  }
   0x1   :  { %s817_s23 = smov 0  }
   0x2 LB: > { %s29_s3 = sadd.s32 1, %s770_s22  ;;  %p645_p0 = scmp.ge.s32.totalorder %s774_s23, 1  ;;  %s774_s23 = sphi %s817_s23, %s17_s23   ;;  %s770_s22 = sphi %s815_s22, %s904_s22   ;;  %s766_s21 = sphi %s813_s21, %s903_s21  }
   0x3   : > { %p31_p1 = scmp.ge.s32.totalorder %s29_s3, 2  ;;  %p249_p2 = scmp.lt.s32.totalorder %s774_s23, 3 }
   0x5   : > { %s906_s3 = smov (%p31_p1, %s29_s3), 0  ;;  %p250_p3 = pnand %p645_p0, %p249_p2 }
   0x6   : > { %v742_v0 = vld [vmem:[%s897_s1] sm:$0xff] (!%p250_p3)   ;;  %s646_s25 = sshll.u32 (!%p250_p3), %s766_s21, 2  ;;  %v743_v1 = vld [vmem:[%s897_s1 + $0x8] sm:$0xff] (!%p250_p3)   ;;  %v776_v2 = vmov (!%p250_p3), 0   ;;  %v744_v3 = vld [vmem:[%s897_s1 + $0x10] sm:$0xff] (!%p250_p3)   ;;  %p315_p5 = scmp.lt.s32.totalorder (!%p250_p3), %s766_s21, 1 }
   0x7   : > { %253 = sbr.rel (%p250_p3) target bundleno = 279 (0x117), region = 40  ;;  %p293_p4 = scmp.lt.s32.totalorder (!%p250_p3), %s646_s25, 7  ;;  %694 = vmatprep.subr.bf16.mxu0 (!%p250_p3), %v742_v0  ;;  %740 = vset.pattern.permute.xlu0 (!%p250_p3), %v776_v2  ;;  %v745_v4 = vld [vmem:[%s897_s1 + $0x18] sm:$0xff] (!%p250_p3)   ;;  %v746_v8 = vld [vmem:[%s897_s1 + $0x20] sm:$0xff] (!%p250_p3)   ;;  %v747_v11 = vld [vmem:[%s897_s1 + $0x28] sm:$0xff] (!%p250_p3)   ;;  %v777_v15 = vmov (!%p250_p3), 0.0  }
   0x8   : > { %695 = vmatpush3.bf16.msra.mxu0 (!%p250_p3), %v742_v0  ;;  %741 = vset.pattern.permute.xlu1 (!%p250_p3), %v776_v2  ;;  %v748_v12 = vld [vmem:[%s897_s1 + $0x30] sm:$0xff] (!%p250_p3)   ;;  %v749_v13 = vld [vmem:[%s897_s1 + $0x38] sm:$0xff] (!%p250_p3)  }
   0x9   : > { %696 = vmatprep.subr.bf16.mxu0 (!%p250_p3), %v743_v1 }
   0xc   : > { %697 = vmatpush3.bf16.msra.mxu0 (!%p250_p3), %v743_v1 }
   0xd   : > { %698 = vmatprep.subr.bf16.mxu0 (!%p250_p3), %v744_v3 }
   0xe   : > { %s908_s25 = smov (!%p293_p4, %s646_s25), 7  ;;  %s910_s21 = smov (!%p315_p5, %s766_s21), 1 }
   0xf   : > { %s647_s30 = sshll.u32 %s908_s25, 2  ;;  %s649_s10 = sshll.u32 %s908_s25, 3 }
  0x10   : > { %s296_s9 = scalar_lea.vmem %s896_s0, %s647_s30  ;;  %s304_s15 = scalar_lea.vmem %s898_s2, %s649_s10  ;;  %699 = vmatpush3.bf16.msra.mxu0 %v744_v3 }
  0x11   : > { %v750_v5 = vld [vmem:[%s296_s9] sm:$0xff]   ;;  %v476_v7 = vld [vmem:[%s304_s15 + $0x10] sm:$0xff]  ;;  %700 = vmatprep.subr.bf16.mxu0 %v745_v4  ;;  %v475_v9 = vld [vmem:[%s304_s15 + $0x8] sm:$0xff]  ;;  %s652_s27 = sshll.u32 %s910_s21, 1 }
  0x12   : > { %710 = vmatprep.mubr.bf16.mxu0 %v750_v5  ;;  %v474_v6 = vld [vmem:[%s304_s15] sm:$0xff]  ;;  %490 = vperm.xlu1 %741, %v476_v7   ;;  %v477_v10 = vld [vmem:[%s304_s15 + $0x18] sm:$0xff]  ;;  %v751_v14 = vld [vmem:[%s296_s9 + $0x8] sm:$0xff]   ;;  %s875_s7 = scalar_lea.vmem %s902_s6, %s652_s27  ;;  %s312_s9 = scalar_lea.vmem %s901_s5, %s647_s30 }
  0x13   : > { %480 = vperm.xlu0 %740, %v474_v6   ;;  %324 = vst [vmem:[%s875_s7] sm:$0x3] %v777_v15 }
  0x14   : > { %701 = vmatpush3.bf16.msra.mxu0 %v745_v4 }
  0x15   : > { %702 = vmatprep.subr.bf16.mxu0 %v746_v8 }
  0x16   : > { %495 = vperm.xlu1 %741, %v477_v10  }
  0x17   : > { %485 = vperm.xlu0 %740, %v475_v9  }
  0x18   : > { %703 = vmatpush3.bf16.msra.mxu0 %v746_v8 }
  0x19   : > { %704 = vmatprep.subr.bf16.mxu0 %v747_v11 }
  0x1a   : > { %v502_v49 = vld [vmem:[%s875_s7] sm:$0x1]  ;;  %v514_v52 = vld [vmem:[%s875_s7 + $0x1] sm:$0x1] }
  0x1c   : > { %705 = vmatpush3.bf16.msra.mxu0 %v747_v11 }
  0x1d   : > { %706 = vmatprep.subr.bf16.mxu0 %v748_v12 }
  0x20   : > { %707 = vmatpush3.bf16.msra.mxu0 %v748_v12 }
  0x21   : > { %708 = vmatprep.subr.bf16.mxu0 %v749_v13 }
  0x24   : > { %709 = vmatpush3.bf16.msra.mxu0 %v749_v13 }
  0x27   : > { %711 = vmatmul.mubr.bf16.vlgmr.msra.gmra.mrb[0].mxu0 %v751_v14 }
  0x91   : > { %v491_v17 = vpop.permute.xlu1 %490 }
  0x92   : > { %v481_v16 = vpop.permute.xlu0 %480 }
  0x95   : > { %v496_v23 = vpop.permute.xlu1 %495 }
  0x96   : > { %v486_v20 = vpop.permute.xlu0 %485 }
  0xfa   : > { %v712_v18 = vpop.f32.mrb[0].mxu0 }
  0xfb   : > { %v439_v19 = vpop.f32.mrb[1].mxu0  ;;  %v500_v26 = vmul.f32 %v712_v18, %v491_v17 }
  0xfc   : > { %v498_v21 = vmul.f32 %v481_v16, %v439_v19  ;;  %v713_v22 = vpop.f32.mrb[2].mxu0 }
  0xfd   : > { %v681_v24 = vpack.c.bf16 %v713_v22, %v712_v18  ;;  %v442_v25 = vpop.f32.mrb[3].mxu0  ;;  %v501_v30 = vmul.f32 %v713_v22, %v496_v23  ;;  %v517_v33 = vmul.f32 %v712_v18, %v500_v26 }
  0xfe   : > { %v676_v27 = vpack.c.bf16 %v442_v25, %v439_v19  ;;  %v499_v28 = vmul.f32 %v486_v20, %v442_v25  ;;  %v515_v29 = vmul.f32 %v498_v21, %v439_v19 }
  0xff   : > { %683 = vst [vmem:[%s312_s9 + $0x8] sm:$0xff] %v681_v24   ;;  %v518_v36 = vmul.f32 %v713_v22, %v501_v30 }
 0x100   : > { %677 = vst [vmem:[%s312_s9] sm:$0xff] %v676_v27   ;;  %v503_v31 = vadd.f32 %v499_v28, %v498_v21  ;;  %v516_v32 = vmul.f32 %v499_v28, %v442_v25 }
 0x102   : > { %v504_v34 = vadd.f32 %v503_v31, %v500_v26  ;;  %v519_v35 = vadd.f32 %v516_v32, %v515_v29 }
 0x104   : > { %v505_v37 = vadd.f32 %v504_v34, %v501_v30  ;;  %v520_v38 = vadd.f32 %v519_v35, %v517_v33 }
 0x106   : > { %v506_v39 = vrot.slane %v505_v37, 4  ;;  %v521_v40 = vadd.f32 %v520_v38, %v518_v36 }
 0x108   : > { %v507_v41 = vadd.f32 %v506_v39, %v505_v37  ;;  %v522_v42 = vrot.slane %v521_v40, 4 }
 0x10a   : > { %v508_v43 = vrot.slane %v507_v41, 2  ;;  %v523_v44 = vadd.f32 %v522_v42, %v521_v40 }
 0x10c   : > { %v509_v45 = vadd.f32 %v508_v43, %v507_v41  ;;  %v524_v46 = vrot.slane %v523_v44, 2 }
 0x10e   : > { %v510_v47 = vrot.slane %v509_v45, 1  ;;  %v525_v48 = vadd.f32 %v524_v46, %v523_v44 }
 0x110   : > { %v511_v50 = vadd.f32 %v510_v47, %v509_v45  ;;  %v526_v51 = vrot.slane %v525_v48, 1 }
 0x112   : > { %v512_v53 = vadd.f32 %v511_v50, %v502_v49  ;;  %v527_v54 = vadd.f32 %v526_v51, %v525_v48 }
 0x114   : > { %513 = vst [vmem:[%s875_s7] sm:$0x1] %v512_v53  ;;  %v528_v55 = vadd.f32 %v527_v54, %v514_v52 }
 0x116   : > { %529 = vst [vmem:[%s875_s7 + $0x1] sm:$0x1] %v528_v55 }
 0x117 PF: > { %s17_s23 = sadd.s32 1, %s774_s23   ;;  %s903_s21 = smov %s770_s22 }
 0x118   : > { %p14_p6 = scmp.ge.s32.totalorder %s17_s23, 4   ;;  %s904_s22 = smov %s906_s3 }
 0x11a   :  { %16 = sbr.rel (!%p14_p6) target bundleno = 2 (0x2), region = 89 }

// kernel: pointnet_feature_upsampling.6
= control target key start
LH: loop header
LB: loop body
LE: loop exit
PB: predicated region body
PF: predicated region fallthrough
CT: control target
= control target key end

     0   :  { %s840_s21 = smov 0   ;;  %s842_s22 = smov 0   ;;  %s929_s0 = inlined_call_operand.vmem [shape: bf16[64,128], index: 0, kind: input, shape index: {}]   ;;  %s930_s1 = inlined_call_operand.vmem [shape: bf16[128,128], index: 1, kind: input, shape index: {}]   ;;  %s931_s2 = inlined_call_operand.vmem [shape: f32[64,1], index: 2, kind: input, shape index: {}]   ;;  %s932_s3 = inlined_call_operand.vmem [shape: f32[1,128], index: 3, kind: input, shape index: {}]   ;;  %s933_s4 = inlined_call_operand.vmem [shape: f32[1,128], index: 4, kind: input, shape index: {}]   ;;  %s934_s5 = inlined_call_operand.vmem [shape: bf16[64,128], index: 5, kind: output, shape index: {0}]   ;;  %s935_s6 = inlined_call_operand.vmem [shape: f32[2,2,128], index: 6, kind: output, shape index: {1}]  }
   0x1   :  { %s844_s23 = smov 0  }
   0x2 LB: > { %s29_s24 = sadd.s32 1, %s797_s22  ;;  %p665_p0 = scmp.ge.s32.totalorder %s801_s23, 1  ;;  %s801_s23 = sphi %s844_s23, %s17_s23   ;;  %s797_s22 = sphi %s842_s22, %s937_s22   ;;  %s793_s21 = sphi %s840_s21, %s936_s21  }
   0x3   : > { %p31_p1 = scmp.ge.s32.totalorder %s29_s24, 2  ;;  %p249_p2 = scmp.lt.s32.totalorder %s801_s23, 3 }
   0x5   : > { %s939_s24 = smov (%p31_p1, %s29_s24), 0  ;;  %p250_p3 = pnand %p665_p0, %p249_p2 }
   0x6   : > { %v771_v0 = vld [vmem:[%s930_s1] sm:$0xff] (!%p250_p3)   ;;  %s666_s27 = sshll.u32 (!%p250_p3), %s793_s21, 2  ;;  %v772_v1 = vld [vmem:[%s930_s1 + $0x8] sm:$0xff] (!%p250_p3)   ;;  %v803_v2 = vmov (!%p250_p3), 0   ;;  %v773_v3 = vld [vmem:[%s930_s1 + $0x10] sm:$0xff] (!%p250_p3)   ;;  %p315_p5 = scmp.lt.s32.totalorder (!%p250_p3), %s793_s21, 1 }
   0x7   : > { %253 = sbr.rel (%p250_p3) target bundleno = 279 (0x117), region = 40  ;;  %p293_p4 = scmp.lt.s32.totalorder (!%p250_p3), %s666_s27, 7  ;;  %723 = vmatprep.subr.bf16.mxu0 (!%p250_p3), %v771_v0  ;;  %769 = vset.pattern.permute.xlu0 (!%p250_p3), %v803_v2  ;;  %v774_v4 = vld [vmem:[%s930_s1 + $0x18] sm:$0xff] (!%p250_p3)   ;;  %v673_v6 = vld [vmem:[%s932_s3] ss:$0 sm:$0xff] (!%p250_p3)  ;;  %v776_v24 = vld [vmem:[%s930_s1 + $0x28] sm:$0xff] (!%p250_p3)  }
   0x8   : > { %724 = vmatpush3.bf16.msra.mxu0 (!%p250_p3), %v771_v0  ;;  %770 = vset.pattern.permute.xlu1 (!%p250_p3), %v803_v2  ;;  %v674_v11 = vld [vmem:[%s933_s4] ss:$0 sm:$0xff] (!%p250_p3)  ;;  %v777_v28 = vld [vmem:[%s930_s1 + $0x30] sm:$0xff] (!%p250_p3)   ;;  %v778_v31 = vld [vmem:[%s930_s1 + $0x38] sm:$0xff] (!%p250_p3)   ;;  %v804_v35 = vmov (!%p250_p3), 0.0  }
   0x9   : > { %725 = vmatprep.subr.bf16.mxu0 (!%p250_p3), %v772_v1  ;;  %v775_v17 = vld [vmem:[%s930_s1 + $0x20] sm:$0xff] (!%p250_p3)  }
   0xc   : > { %726 = vmatpush3.bf16.msra.mxu0 (!%p250_p3), %v772_v1 }
   0xd   : > { %727 = vmatprep.subr.bf16.mxu0 (!%p250_p3), %v773_v3 }
   0xe   : > { %s941_s27 = smov (!%p293_p4, %s666_s27), 7  ;;  %s943_s21 = smov (!%p315_p5, %s793_s21), 1 }
   0xf   : > { %s667_s8 = sshll.u32 %s941_s27, 2  ;;  %s669_s12 = sshll.u32 %s941_s27, 3 }
  0x10   : > { %s296_s11 = scalar_lea.vmem %s929_s0, %s667_s8  ;;  %s304_s15 = scalar_lea.vmem %s931_s2, %s669_s12  ;;  %728 = vmatpush3.bf16.msra.mxu0 %v773_v3 }
  0x11   : > { %v694_v5 = vld [vmem:[%s296_s11] sm:$0xff]   ;;  %v496_v10 = vld [vmem:[%s304_s15 + $0x10] sm:$0xff]  ;;  %v711_v12 = vld [vmem:[%s296_s11 + $0x8] sm:$0xff]   ;;  %729 = vmatprep.subr.bf16.mxu0 %v774_v4  ;;  %s672_s12 = sshll.u32 %s943_s21, 1  ;;  %s312_s17 = scalar_lea.vmem %s934_s5, %s667_s8 }
  0x12   : > { %v695_v7 = vunpack.c.l.bf16 %v694_v5  ;;  %v696_v8 = vunpack.c.h.bf16 %v694_v5  ;;  %v494_v9 = vld [vmem:[%s304_s15] sm:$0xff]  ;;  %510 = vperm.xlu1 %770, %v496_v10   ;;  %v495_v15 = vld [vmem:[%s304_s15 + $0x8] sm:$0xff]  ;;  %v497_v16 = vld [vmem:[%s304_s15 + $0x18] sm:$0xff]  ;;  %v699_v20 = vunpack.c.l.bf16 %v711_v12  ;;  %v700_v21 = vunpack.c.h.bf16 %v711_v12  ;;  %s908_s15 = scalar_lea.vmem %s935_s6, %s672_s12 }
  0x13   : > { %500 = vperm.xlu0 %769, %v494_v9   ;;  %324 = vst [vmem:[%s908_s15] sm:$0x3] %v804_v35 }
  0x14   : > { %v356_v13 = vmul.f32 %v695_v7, %v673_v6  ;;  %v357_v14 = vmul.f32 %v696_v8, %v673_v6  ;;  %730 = vmatpush3.bf16.msra.mxu0 %v774_v4  ;;  %v358_v26 = vmul.f32 %v699_v20, %v673_v6  ;;  %v359_v27 = vmul.f32 %v700_v21, %v673_v6 }
  0x15   : > { %731 = vmatprep.subr.bf16.mxu0 %v775_v17 }
  0x16   : > { %v367_v18 = vadd.f32 %v674_v11, %v356_v13  ;;  %v368_v19 = vadd.f32 %v674_v11, %v357_v14  ;;  %515 = vperm.xlu1 %770, %v497_v16   ;;  %v369_v29 = vadd.f32 %v674_v11, %v358_v26  ;;  %v370_v30 = vadd.f32 %v674_v11, %v359_v27 }
  0x17   : > { %505 = vperm.xlu0 %769, %v495_v15  }
  0x18   : > { %v371_v22 = vmax.f32 %v367_v18, 0.0  ;;  %v372_v23 = vmax.f32 %v368_v19, 0.0  ;;  %732 = vmatpush3.bf16.msra.mxu0 %v775_v17  ;;  %v373_v32 = vmax.f32 %v369_v29, 0.0  ;;  %v374_v33 = vmax.f32 %v370_v30, 0.0 }
  0x19   : > { %733 = vmatprep.subr.bf16.mxu0 %v776_v24 }
  0x1a   : > { %v375_v25 = vpack.c.bf16 %v372_v23, %v371_v22  ;;  %v376_v34 = vpack.c.bf16 %v374_v33, %v373_v32  ;;  %v522_v5 = vld [vmem:[%s908_s15] sm:$0x1]  ;;  %v534_v8 = vld [vmem:[%s908_s15 + $0x1] sm:$0x1] }
  0x1c   : > { %739 = vmatprep.mubr.bf16.mxu0 %v375_v25  ;;  %734 = vmatpush3.bf16.msra.mxu0 %v776_v24 }
  0x1d   : > { %735 = vmatprep.subr.bf16.mxu0 %v777_v28 }
  0x20   : > { %736 = vmatpush3.bf16.msra.mxu0 %v777_v28 }
  0x21   : > { %737 = vmatprep.subr.bf16.mxu0 %v778_v31 }
  0x24   : > { %738 = vmatpush3.bf16.msra.mxu0 %v778_v31 }
  0x27   : > { %740 = vmatmul.mubr.bf16.vlgmr.msra.gmra.mrb[0].mxu0 %v376_v34 }
  0x91   : > { %v511_v37 = vpop.permute.xlu1 %510 }
  0x92   : > { %v501_v36 = vpop.permute.xlu0 %500 }
  0x95   : > { %v516_v43 = vpop.permute.xlu1 %515 }
  0x96   : > { %v506_v40 = vpop.permute.xlu0 %505 }
  0xfa   : > { %v741_v38 = vpop.f32.mrb[0].mxu0 }
  0xfb   : > { %v459_v39 = vpop.f32.mrb[1].mxu0  ;;  %v520_v46 = vmul.f32 %v741_v38, %v511_v37 }
  0xfc   : > { %v518_v41 = vmul.f32 %v501_v36, %v459_v39  ;;  %v742_v42 = vpop.f32.mrb[2].mxu0 }
  0xfd   : > { %v709_v44 = vpack.c.bf16 %v742_v42, %v741_v38  ;;  %v462_v45 = vpop.f32.mrb[3].mxu0  ;;  %v521_v50 = vmul.f32 %v742_v42, %v516_v43  ;;  %v537_v53 = vmul.f32 %v741_v38, %v520_v46 }
  0xfe   : > { %v704_v47 = vpack.c.bf16 %v462_v45, %v459_v39  ;;  %v519_v48 = vmul.f32 %v506_v40, %v462_v45  ;;  %v535_v49 = vmul.f32 %v518_v41, %v459_v39 }
  0xff   : > { %712 = vst [vmem:[%s312_s17 + $0x8] sm:$0xff] %v709_v44   ;;  %v538_v56 = vmul.f32 %v742_v42, %v521_v50 }
 0x100   : > { %705 = vst [vmem:[%s312_s17] sm:$0xff] %v704_v47   ;;  %v523_v51 = vadd.f32 %v519_v48, %v518_v41  ;;  %v536_v52 = vmul.f32 %v519_v48, %v462_v45 }
 0x102   : > { %v524_v54 = vadd.f32 %v523_v51, %v520_v46  ;;  %v539_v55 = vadd.f32 %v536_v52, %v535_v49 }
 0x104   : > { %v525_v57 = vadd.f32 %v524_v54, %v521_v50  ;;  %v540_v58 = vadd.f32 %v539_v55, %v537_v53 }
 0x106   : > { %v526_v59 = vrot.slane %v525_v57, 4  ;;  %v541_v60 = vadd.f32 %v540_v58, %v538_v56 }
 0x108   : > { %v527_v61 = vadd.f32 %v526_v59, %v525_v57  ;;  %v542_v62 = vrot.slane %v541_v60, 4 }
 0x10a   : > { %v528_v63 = vrot.slane %v527_v61, 2  ;;  %v543_v0 = vadd.f32 %v542_v62, %v541_v60 }
 0x10c   : > { %v529_v1 = vadd.f32 %v528_v63, %v527_v61  ;;  %v544_v2 = vrot.slane %v543_v0, 2 }
 0x10e   : > { %v530_v3 = vrot.slane %v529_v1, 1  ;;  %v545_v4 = vadd.f32 %v544_v2, %v543_v0 }
 0x110   : > { %v531_v6 = vadd.f32 %v530_v3, %v529_v1  ;;  %v546_v7 = vrot.slane %v545_v4, 1 }
 0x112   : > { %v532_v9 = vadd.f32 %v531_v6, %v522_v5  ;;  %v547_v10 = vadd.f32 %v546_v7, %v545_v4 }
 0x114   : > { %533 = vst [vmem:[%s908_s15] sm:$0x1] %v532_v9  ;;  %v548_v11 = vadd.f32 %v547_v10, %v534_v8 }
 0x116   : > { %549 = vst [vmem:[%s908_s15 + $0x1] sm:$0x1] %v548_v11 }
 0x117 PF: > { %s17_s23 = sadd.s32 1, %s801_s23   ;;  %s936_s21 = smov %s797_s22 }
 0x118   : > { %p14_p6 = scmp.ge.s32.totalorder %s17_s23, 4   ;;  %s937_s22 = smov %s939_s24 }
 0x11a   :  { %16 = sbr.rel (!%p14_p6) target bundleno = 2 (0x2), region = 89 }

</bundles_post_ra>
